<compile_context>
chip_gen: v6e
topology: v6e:2x2x1
jax: 0.10.0
libtpu: 0.0.40
codegen_flags: <defaults>
</compile_context>

<pallas_src>
import functools

import jax
import jax.numpy as jnp
from jax.experimental import pallas as pl
from jax.experimental.pallas import tpu as pltpu


def _round_up(x, m):
    return ((x + m - 1) // m) * m


def _vmem_budget():
    """Per-generation (tile-sizing budget, vmem_limit_bytes)."""
    phys = None
    try:
        info = pltpu.get_tpu_info()
        phys = getattr(info, "vmem_capacity_bytes", None)
    except Exception:
        phys = None
    if phys is None or phys <= 64 * 1024 * 1024:
        # v7x (64 MiB per TensorCore) or unknown: stay conservative so
        # double-buffered blocks + compiler scratch fit.
        return 36 * 1024 * 1024, 48 * 1024 * 1024
    # v5e / v6e: 128 MiB physical VMEM.
    return 56 * 1024 * 1024, 96 * 1024 * 1024


def _choose_tiles(B, S_pad, D_pad, Din_pad, src_isz, budget, block_batch, block_s):
    """Pick (batch tile TB, sequence tile TS), both hardware aligned."""
    if block_s is None:
        TS = min(S_pad, 512)
    else:
        TS = min(S_pad, max(128, _round_up(block_s, 128)))

    def per_row(ts):
        return (2 * ts * D_pad * src_isz   # double-buffered source_hids chunk
                + 3 * ts * D_pad * 4       # f32 temporaries of the VPU contractions
                + 2 * S_pad * 4            # resident f32 attn block (double-buffered)
                + 4 * D_pad * 4            # x / acc scratch + ctx output buffers
                + 2 * Din_pad * src_isz)   # input rows

    fixed = 2 * Din_pad * D_pad * 4        # resident weight block (double-buffered)
    # TODO(synk): single-buffer the resident weight block (pl.Buffered(1)) once
    # pipeline_mode support is verified on the target jax version.

    # Shrink the sequence tile first if even an 8-row batch tile would not fit.
    while TS > 128 and fixed + 8 * per_row(TS) > budget:
        TS = max(128, _round_up(TS // 2, 128))

    if block_batch is not None:
        TB = max(8, _round_up(block_batch, 8))
    else:
        avail = max(budget - fixed, 8 * per_row(TS))
        tb = max(8, (avail // per_row(TS)) // 8 * 8)
        # keep >= 2 batch grid steps when B > 8 so ("parallel",) feeds both
        # TensorCores on v7x (costs nothing on single-TC v5e/v6e).
        two_core_cap = max(8, _round_up((B + 1) // 2, 8))
        TB = max(8, (min(tb, two_core_cap) // 8) * 8)
    return int(TB), int(TS)


def attention_kernel(inp_ref, w_ref, src_ref, out_ref, attn_ref,
                     x_sc, m_sc, l_sc, acc_sc, *, ts, s_valid):
    ki = pl.program_id(1)
    nk = pl.num_programs(1)

    @pl.when(ki == 0)
    def _init():
        # Projection on the MXU once per batch block, f32 accumulation.
        x_sc[...] = jnp.dot(inp_ref[...], w_ref[...],
                            preferred_element_type=jnp.float32)
        m_sc[...] = jnp.full(m_sc.shape, -jnp.inf, m_sc.dtype)
        l_sc[...] = jnp.zeros(l_sc.shape, l_sc.dtype)
        acc_sc[...] = jnp.zeros(acc_sc.shape, acc_sc.dtype)

    src = src_ref[...]                    # (TB, TS, D_pad), native dtype
    x = x_sc[...]                         # (TB, D_pad), f32

    # scores[b, s] = sum_d src[b, s, d] * x[b, d]
    # VPU multiply + XLU lane reduce; result is 2-D and sublane-dense.
    scores = jnp.sum(src * x[:, None, :], axis=2)        # (TB, TS) f32

    # Mask padded source positions so the softmax ignores them.
    if s_valid < attn_ref.shape[1]:
        col = ki * ts + jax.lax.broadcasted_iota(jnp.int32, scores.shape, 1)
        scores = jnp.where(col < s_valid, scores, -jnp.inf)

    # Stash raw scores in the resident attention block; normalized at the end.
    if ts == attn_ref.shape[1]:
        attn_ref[...] = scores
    else:
        start = pl.multiple_of(ki * ts, ts)
        attn_ref[:, pl.ds(start, ts)] = scores

    # Online-softmax update (flash-style), f32 throughout.
    m_prev = m_sc[...]
    m_new = jnp.maximum(m_prev, jnp.max(scores, axis=1, keepdims=True))
    alpha = jnp.exp(m_prev - m_new)                       # (TB, 1)
    p = jnp.exp(scores - m_new)                           # (TB, TS)
    l_sc[...] = alpha * l_sc[...] + jnp.sum(p, axis=1, keepdims=True)
    acc_sc[...] = alpha * acc_sc[...] + jnp.sum(p[:, :, None] * src, axis=1)
    m_sc[...] = m_new

    @pl.when(ki == nk - 1)
    def _finalize():
        inv_l = 1.0 / l_sc[...]                           # exact softmax denom
        out_ref[...] = (acc_sc[...] * inv_l).astype(out_ref.dtype)
        attn_ref[...] = (jnp.exp(attn_ref[...] - m_sc[...]) * inv_l
                         ).astype(attn_ref.dtype)


def attention_layer(inp, w_proj, source_hids, *, block_batch=None, block_s=None):
    """Pallas Luong attention. Grid: (batch blocks ["parallel"], S blocks ["arbitrary"])."""
    B, D_in = inp.shape
    Bs, S, D_out = source_hids.shape
    assert Bs == B and w_proj.shape == (D_in, D_out)

    # Lane-dense padding (unmasked MXU/VPU tiles and vector stores).
    Din_pad = _round_up(D_in, 128)
    D_pad = _round_up(D_out, 128)
    S_pad = _round_up(S, 128)

    budget, vmem_limit = _vmem_budget()
    src_isz = jnp.dtype(source_hids.dtype).itemsize
    TB, TS = _choose_tiles(B, S_pad, D_pad, Din_pad, src_isz, budget,
                           block_batch, block_s)
    B_pad = _round_up(B, TB)

    # Zero padding: padded feature columns contribute 0 to every dot product;
    # padded source positions are masked to -inf inside the kernel; padded
    # batch rows stay finite (uniform softmax, zero context) and are sliced off.
    inp_p = jnp.pad(inp, ((0, B_pad - B), (0, Din_pad - D_in)))
    w_p = jnp.pad(w_proj, ((0, Din_pad - D_in), (0, D_pad - D_out)))
    src_p = jnp.pad(source_hids,
                    ((0, B_pad - B), (0, S_pad - S), (0, D_pad - D_out)))

    kernel = functools.partial(attention_kernel, ts=TS, s_valid=S)

    ctx, attn = pl.pallas_call(
        kernel,
        out_shape=(
            jax.ShapeDtypeStruct((B_pad, D_pad), source_hids.dtype),
            jax.ShapeDtypeStruct((B_pad, S_pad), jnp.float32),
        ),
        grid=(B_pad // TB, S_pad // TS),
        in_specs=[
            pl.BlockSpec((TB, Din_pad), lambda i, k: (i, 0)),
            pl.BlockSpec((Din_pad, D_pad), lambda i, k: (0, 0)),   # resident weight
            pl.BlockSpec((TB, TS, D_pad), lambda i, k: (i, k, 0)),  # streamed source
        ],
        out_specs=(
            pl.BlockSpec((TB, D_pad), lambda i, k: (i, 0)),   # resident over S axis
            pl.BlockSpec((TB, S_pad), lambda i, k: (i, 0)),   # resident over S axis
        ),
        scratch_shapes=[
            pltpu.VMEM((TB, D_pad), jnp.float32),   # x = input @ W
            pltpu.VMEM((TB, 1), jnp.float32),       # running max m
            pltpu.VMEM((TB, 1), jnp.float32),       # running denom l
            pltpu.VMEM((TB, D_pad), jnp.float32),   # context accumulator
        ],
        compiler_params=pltpu.CompilerParams(
            dimension_semantics=("parallel", "arbitrary"),
            vmem_limit_bytes=vmem_limit,
        ),
    )(inp_p, w_p, src_p)

    return ctx[:B, :D_out], attn[:B, :S]


def attention_layer_ref(inp, w_proj, source_hids):
    """Pure-JAX reference mirroring the PyTorch forward."""
    x = inp.astype(jnp.float32) @ w_proj.astype(jnp.float32)
    scores = jnp.sum(source_hids.astype(jnp.float32) * x[:, None, :], axis=2)
    probs = jax.nn.softmax(scores, axis=1)
    ctx = jnp.sum(probs[:, :, None] * source_hids.astype(jnp.float32), axis=1)
    return ctx.astype(source_hids.dtype), probs


if __name__ == "__main__":
    # Small shapes consistent with the module's forward:
    #   input: (B, input_embed_dim), source_hids: (B, S, output_embed_dim)
    B, S = 2, 8
    input_embed_dim, output_embed_dim = 32, 32

    key = jax.random.PRNGKey(0)
    k_in, k_src, k_w = jax.random.split(key, 3)

    inp = jax.random.normal(k_in, (B, input_embed_dim), dtype=jnp.float32)
    source_hids = jax.random.normal(k_src, (B, S, output_embed_dim), dtype=jnp.float32)

    # Linear(input_embed_dim, output_embed_dim, bias=False):
    #   weight ~ Normal(0, 0.1), shape (out, in) in PyTorch; store transposed (in, out).
    w_pt = 0.1 * jax.random.normal(k_w, (output_embed_dim, input_embed_dim),
                                   dtype=jnp.float32)
    w_proj = w_pt.T  # (D_in, D_out)

    # 1) Basic path: single batch block, single S block.
    ctx, attn = attention_layer(inp, w_proj, source_hids)
    jax.block_until_ready((ctx, attn))
    ctx_r, attn_r = attention_layer_ref(inp, w_proj, source_hids)
    assert ctx.shape == (B, output_embed_dim) and attn.shape == (B, S)
    assert jnp.allclose(ctx, ctx_r, atol=2e-3, rtol=2e-3), "context mismatch"
    assert jnp.allclose(attn, attn_r, atol=2e-3, rtol=2e-3), "attn mismatch"

    # 2) Multi-step batch grid + batch padding (TB=8 over B=20 -> 3 batch steps).
    B2 = 20
    k_in2, k_src2 = jax.random.split(jax.random.PRNGKey(1), 2)
    inp2 = jax.random.normal(k_in2, (B2, input_embed_dim), dtype=jnp.float32)
    src2 = jax.random.normal(k_src2, (B2, S, output_embed_dim), dtype=jnp.float32)
    ctx2, attn2 = attention_layer(inp2, w_proj, src2, block_batch=8)
    jax.block_until_ready((ctx2, attn2))
    ctx2_r, attn2_r = attention_layer_ref(inp2, w_proj, src2)
    assert jnp.allclose(ctx2, ctx2_r, atol=2e-3, rtol=2e-3), "gridded context mismatch"
    assert jnp.allclose(attn2, attn2_r, atol=2e-3, rtol=2e-3), "gridded attn mismatch"

    # 3) Multi-step S grid (online softmax): S=200 -> S_pad=256, TS=128 -> 2 S steps,
    #    exercising the padded-source-position mask (56 padded columns).
    B3, S3 = 4, 200
    k_in3, k_src3 = jax.random.split(jax.random.PRNGKey(2), 2)
    inp3 = jax.random.normal(k_in3, (B3, input_embed_dim), dtype=jnp.float32)
    src3 = jax.random.normal(k_src3, (B3, S3, output_embed_dim), dtype=jnp.float32)
    ctx3, attn3 = attention_layer(inp3, w_proj, src3, block_s=128)
    jax.block_until_ready((ctx3, attn3))
    ctx3_r, attn3_r = attention_layer_ref(inp3, w_proj, src3)
    assert jnp.allclose(ctx3, ctx3_r, atol=2e-3, rtol=2e-3), "S-tiled context mismatch"
    assert jnp.allclose(attn3, attn3_r, atol=2e-3, rtol=2e-3), "S-tiled attn mismatch"

    print("KERNEL_OK")
</pallas_src>

<mosaic_0001>
module attributes {stable_mosaic.version = 11 : i64} {
  func.func @attention_kernel(%arg0: i32, %arg1: i32, %arg2: memref<8x128xf32, #tpu.memory_space<vmem>>, %arg3: memref<128x128xf32, #tpu.memory_space<vmem>>, %arg4: memref<8x128x128xf32, #tpu.memory_space<vmem>>, %arg5: memref<8x128xf32, #tpu.memory_space<vmem>>, %arg6: memref<8x128xf32, #tpu.memory_space<vmem>>, %arg7: memref<8x128xf32, #tpu.memory_space<vmem>>, %arg8: memref<8x1xf32, #tpu.memory_space<vmem>>, %arg9: memref<8x1xf32, #tpu.memory_space<vmem>>, %arg10: memref<8x128xf32, #tpu.memory_space<vmem>>) attributes {dimension_semantics = [#tpu.dimension_semantics<parallel>, #tpu.dimension_semantics<arbitrary>], iteration_bounds = array<i64: 1, 1>, scalar_prefetch = 0 : i64, scratch_operands = 4 : i64, tpu.core_type = #tpu.core_type<tc>, window_params = [{transform_indices = @transform_0, window_bounds = array<i64: 8, 128>}, {pipeline_mode = #tpu.pipeline_mode<synchronous>, transform_indices = @transform_1, window_bounds = array<i64: 128, 128>}, {transform_indices = @transform_2, window_bounds = array<i64: 8, 128, 128>}, {transform_indices = @transform_3, window_bounds = array<i64: 8, 128>}, {transform_indices = @transform_4, window_bounds = array<i64: 8, 128>}]} {
    %c0_i32 = arith.constant 0 : i32
    %0 = arith.cmpi eq, %arg1, %c0_i32 : i32
    %1 = arith.extui %0 : i1 to i32
    %c0_i32_0 = arith.constant 0 : i32
    %2 = arith.cmpi ne, %1, %c0_i32_0 : i32
    scf.if %2 {
      %c0_25 = arith.constant 0 : index
      %c0_26 = arith.constant 0 : index
      %46 = vector.load %arg2[%c0_25, %c0_26] : memref<8x128xf32, #tpu.memory_space<vmem>>, vector<8x128xf32>
      %c0_27 = arith.constant 0 : index
      %c0_28 = arith.constant 0 : index
      %47 = vector.load %arg3[%c0_27, %c0_28] : memref<128x128xf32, #tpu.memory_space<vmem>>, vector<128x128xf32>
      %cst_29 = arith.constant dense<0.000000e+00> : vector<8x128xf32>
      %48 = tpu.matmul %46, %47, %cst_29 {dimension_numbers = #tpu.dot_dimension_numbers<[1], [0], [0], [1], [0, 0, 1, 1], [], []>} : vector<8x128xf32>, vector<128x128xf32>, vector<8x128xf32> -> vector<8x128xf32>
      %c0_30 = arith.constant 0 : index
      %c0_31 = arith.constant 0 : index
      %49 = vector.load %arg7[%c0_30, %c0_31] : memref<8x128xf32, #tpu.memory_space<vmem>>, vector<8x128xf32>
      tpu.vector_store %arg7[%c0_30, %c0_31], %48 {strides = array<i32>} : memref<8x128xf32, #tpu.memory_space<vmem>>, vector<8x128xf32>,
      %cst_32 = arith.constant 0xFF800000 : f32
      %50 = vector.broadcast %cst_32 : f32 to vector<8x1xf32>
      %c0_33 = arith.constant 0 : index
      %c0_34 = arith.constant 0 : index
      %51 = vector.load %arg8[%c0_33, %c0_34] : memref<8x1xf32, #tpu.memory_space<vmem>>, vector<8x1xf32>
      tpu.vector_store %arg8[%c0_33, %c0_34], %50 {strides = array<i32>} : memref<8x1xf32, #tpu.memory_space<vmem>>, vector<8x1xf32>,
      %cst_35 = arith.constant 0.000000e+00 : f32
      %52 = vector.broadcast %cst_35 : f32 to vector<8x1xf32>
      %c0_36 = arith.constant 0 : index
      %c0_37 = arith.constant 0 : index
      %53 = vector.load %arg9[%c0_36, %c0_37] : memref<8x1xf32, #tpu.memory_space<vmem>>, vector<8x1xf32>
      tpu.vector_store %arg9[%c0_36, %c0_37], %52 {strides = array<i32>} : memref<8x1xf32, #tpu.memory_space<vmem>>, vector<8x1xf32>,
      %cst_38 = arith.constant 0.000000e+00 : f32
      %54 = vector.broadcast %cst_38 : f32 to vector<8x128xf32>
      %c0_39 = arith.constant 0 : index
      %c0_40 = arith.constant 0 : index
      %55 = vector.load %arg10[%c0_39, %c0_40] : memref<8x128xf32, #tpu.memory_space<vmem>>, vector<8x128xf32>
      tpu.vector_store %arg10[%c0_39, %c0_40], %54 {strides = array<i32>} : memref<8x128xf32, #tpu.memory_space<vmem>>, vector<8x128xf32>,
    } else {
    }
    %c0 = arith.constant 0 : index
    %c0_1 = arith.constant 0 : index
    %c0_2 = arith.constant 0 : index
    %3 = vector.load %arg4[%c0, %c0_1, %c0_2] : memref<8x128x128xf32, #tpu.memory_space<vmem>>, vector<8x128x128xf32>
    %c0_3 = arith.constant 0 : index
    %c0_4 = arith.constant 0 : index
    %4 = vector.load %arg7[%c0_3, %c0_4] : memref<8x128xf32, #tpu.memory_space<vmem>>, vector<8x128xf32>
    %5 = vector.shape_cast %4 : vector<8x128xf32> to vector<8x1x128xf32>
    %6 = vector.broadcast %5 : vector<8x1x128xf32> to vector<8x128x128xf32>
    %7 = arith.mulf %3, %6 : vector<8x128x128xf32>
    %cst = arith.constant dense<0.000000e+00> : vector<8x128xf32>
    %8 = vector.multi_reduction <add>, %7, %cst [2] : vector<8x128x128xf32> to vector<8x128xf32>
    %c128_i32 = arith.constant 128 : i32
    %9 = arith.muli %arg1, %c128_i32 : i32
    %10 = tpu.iota {dimensions = array<i32: 1>} : vector<8x128xi32>
    %11 = vector.broadcast %9 : i32 to vector<8x128xi32>
    %12 = arith.addi %11, %10 : vector<8x128xi32>
    %c8_i32 = arith.constant 8 : i32
    %13 = vector.broadcast %c8_i32 : i32 to vector<8x128xi32>
    %14 = arith.cmpi slt, %12, %13 : vector<8x128xi32>
    %cst_5 = arith.constant 0xFF800000 : f32
    %15 = vector.broadcast %cst_5 : f32 to vector<8x128xf32>
    %16 = arith.select %14, %8, %15 : vector<8x128xi1>, vector<8x128xf32>
    %c0_6 = arith.constant 0 : index
    %c0_7 = arith.constant 0 : index
    %17 = vector.load %arg6[%c0_6, %c0_7] : memref<8x128xf32, #tpu.memory_space<vmem>>, vector<8x128xf32>
    tpu.vector_store %arg6[%c0_6, %c0_7], %16 {strides = array<i32>} : memref<8x128xf32, #tpu.memory_space<vmem>>, vector<8x128xf32>,
    %c0_8 = arith.constant 0 : index
    %c0_9 = arith.constant 0 : index
    %18 = vector.load %arg8[%c0_8, %c0_9] : memref<8x1xf32, #tpu.memory_space<vmem>>, vector<8x1xf32>
    %cst_10 = arith.constant dense<0xFF800000> : vector<8xf32>
    %19 = vector.multi_reduction <maximumf>, %16, %cst_10 [1] : vector<8x128xf32> to vector<8xf32>
    %20 = vector.shape_cast %19 : vector<8xf32> to vector<8x1xf32>
    %21 = arith.maximumf %18, %20 : vector<8x1xf32>
    %22 = arith.subf %18, %21 : vector<8x1xf32>
    %23 = math.exp %22 : vector<8x1xf32>
    %24 = vector.broadcast %21 : vector<8x1xf32> to vector<8x128xf32>
    %25 = arith.subf %16, %24 : vector<8x128xf32>
    %26 = math.exp %25 : vector<8x128xf32>
    %c0_11 = arith.constant 0 : index
    %c0_12 = arith.constant 0 : index
    %27 = vector.load %arg9[%c0_11, %c0_12] : memref<8x1xf32, #tpu.memory_space<vmem>>, vector<8x1xf32>
    %28 = arith.mulf %23, %27 : vector<8x1xf32>
    %cst_13 = arith.constant dense<0.000000e+00> : vector<8xf32>
    %29 = vector.multi_reduction <add>, %26, %cst_13 [1] : vector<8x128xf32> to vector<8xf32>
    %30 = vector.shape_cast %29 : vector<8xf32> to vector<8x1xf32>
    %31 = arith.addf %28, %30 : vector<8x1xf32>
    %c0_14 = arith.constant 0 : index
    %c0_15 = arith.constant 0 : index
    %32 = vector.load %arg9[%c0_14, %c0_15] : memref<8x1xf32, #tpu.memory_space<vmem>>, vector<8x1xf32>
    tpu.vector_store %arg9[%c0_14, %c0_15], %31 {strides = array<i32>} : memref<8x1xf32, #tpu.memory_space<vmem>>, vector<8x1xf32>,
    %c0_16 = arith.constant 0 : index
    %c0_17 = arith.constant 0 : index
    %33 = vector.load %arg10[%c0_16, %c0_17] : memref<8x128xf32, #tpu.memory_space<vmem>>, vector<8x128xf32>
    %34 = vector.broadcast %23 : vector<8x1xf32> to vector<8x128xf32>
    %35 = arith.mulf %34, %33 : vector<8x128xf32>
    %36 = vector.shape_cast %26 : vector<8x128xf32> to vector<8x128x1xf32>
    %37 = vector.broadcast %36 : vector<8x128x1xf32> to vector<8x128x128xf32>
    %38 = arith.mulf %37, %3 : vector<8x128x128xf32>
    %cst_18 = arith.constant dense<0.000000e+00> : vector<8x128xf32>
    %39 = vector.multi_reduction <add>, %38, %cst_18 [1] : vector<8x128x128xf32> to vector<8x128xf32>
    %40 = arith.addf %35, %39 : vector<8x128xf32>
    %c0_19 = arith.constant 0 : index
    %c0_20 = arith.constant 0 : index
    %41 = vector.load %arg10[%c0_19, %c0_20] : memref<8x128xf32, #tpu.memory_space<vmem>>, vector<8x128xf32>
    tpu.vector_store %arg10[%c0_19, %c0_20], %40 {strides = array<i32>} : memref<8x128xf32, #tpu.memory_space<vmem>>, vector<8x128xf32>,
    %c0_21 = arith.constant 0 : index
    %c0_22 = arith.constant 0 : index
    %42 = vector.load %arg8[%c0_21, %c0_22] : memref<8x1xf32, #tpu.memory_space<vmem>>, vector<8x1xf32>
    tpu.vector_store %arg8[%c0_21, %c0_22], %21 {strides = array<i32>} : memref<8x1xf32, #tpu.memory_space<vmem>>, vector<8x1xf32>,
    %c0_i32_23 = arith.constant 0 : i32
    %43 = arith.cmpi eq, %arg1, %c0_i32_23 : i32
    %44 = arith.extui %43 : i1 to i32
    %c0_i32_24 = arith.constant 0 : i32
    %45 = arith.cmpi ne, %44, %c0_i32_24 : i32
    scf.if %45 {
      %c0_25 = arith.constant 0 : index
      %c0_26 = arith.constant 0 : index
      %46 = vector.load %arg9[%c0_25, %c0_26] : memref<8x1xf32, #tpu.memory_space<vmem>>, vector<8x1xf32>
      %cst_27 = arith.constant 1.000000e+00 : f32
      %47 = vector.broadcast %cst_27 : f32 to vector<8x1xf32>
      %48 = arith.divf %47, %46 : vector<8x1xf32>
      %c0_28 = arith.constant 0 : index
      %c0_29 = arith.constant 0 : index
      %49 = vector.load %arg10[%c0_28, %c0_29] : memref<8x128xf32, #tpu.memory_space<vmem>>, vector<8x128xf32>
      %50 = vector.broadcast %48 : vector<8x1xf32> to vector<8x128xf32>
      %51 = arith.mulf %49, %50 : vector<8x128xf32>
      %c0_30 = arith.constant 0 : index
      %c0_31 = arith.constant 0 : index
      %52 = vector.load %arg5[%c0_30, %c0_31] : memref<8x128xf32, #tpu.memory_space<vmem>>, vector<8x128xf32>
      tpu.vector_store %arg5[%c0_30, %c0_31], %51 {strides = array<i32>} : memref<8x128xf32, #tpu.memory_space<vmem>>, vector<8x128xf32>,
      %c0_32 = arith.constant 0 : index
      %c0_33 = arith.constant 0 : index
      %53 = vector.load %arg6[%c0_32, %c0_33] : memref<8x128xf32, #tpu.memory_space<vmem>>, vector<8x128xf32>
      %c0_34 = arith.constant 0 : index
      %c0_35 = arith.constant 0 : index
      %54 = vector.load %arg8[%c0_34, %c0_35] : memref<8x1xf32, #tpu.memory_space<vmem>>, vector<8x1xf32>
      %55 = vector.broadcast %54 : vector<8x1xf32> to vector<8x128xf32>
      %56 = arith.subf %53, %55 : vector<8x128xf32>
      %57 = math.exp %56 : vector<8x128xf32>
      %58 = vector.broadcast %48 : vector<8x1xf32> to vector<8x128xf32>
      %59 = arith.mulf %57, %58 : vector<8x128xf32>
      %c0_36 = arith.constant 0 : index
      %c0_37 = arith.constant 0 : index
      %60 = vector.load %arg6[%c0_36, %c0_37] : memref<8x128xf32, #tpu.memory_space<vmem>>, vector<8x128xf32>
      tpu.vector_store %arg6[%c0_36, %c0_37], %59 {strides = array<i32>} : memref<8x128xf32, #tpu.memory_space<vmem>>, vector<8x128xf32>,
    } else {
    }
    return
  }
  func.func @transform_0(%arg0: i32, %arg1: i32) -> (i32, i32) {
    %c0_i32 = arith.constant 0 : i32
    %c0_i32_0 = arith.constant 0 : i32
    return %arg0, %c0_i32 : i32, i32
  }
  func.func @transform_1(%arg0: i32, %arg1: i32) -> (i32, i32) {
    %c0_i32 = arith.constant 0 : i32
    %c0_i32_0 = arith.constant 0 : i32
    %c0_i32_1 = arith.constant 0 : i32
    return %c0_i32, %c0_i32_0 : i32, i32
  }
  func.func @transform_2(%arg0: i32, %arg1: i32) -> (i32, i32, i32) {
    %c0_i32 = arith.constant 0 : i32
    %c0_i32_0 = arith.constant 0 : i32
    return %arg0, %arg1, %c0_i32 : i32, i32, i32
  }
  func.func @transform_3(%arg0: i32, %arg1: i32) -> (i32, i32) {
    %c0_i32 = arith.constant 0 : i32
    %c0_i32_0 = arith.constant 0 : i32
    return %arg0, %c0_i32 : i32, i32
  }
  func.func @transform_4(%arg0: i32, %arg1: i32) -> (i32, i32) {
    %c0_i32 = arith.constant 0 : i32
    %c0_i32_0 = arith.constant 0 : i32
    return %arg0, %c0_i32 : i32, i32
  }
}

</mosaic_0001>

<bundles_post_ra>
// kernel: tpu_custom_call.1
= control target key start
LH: loop header
LB: loop body
LE: loop exit
PB: predicated region body
PF: predicated region fallthrough
CT: control target
= control target key end

     0   :  { %10 = vsyncpa [#allocation7], 0  ;;  %s3798_s0 = inlined_call_operand.hbm [shape: f32[8,128], index: 0, kind: input, shape index: {}]   ;;  %s3799_s1 = inlined_call_operand.hbm [shape: f32[128,128], index: 1, kind: input, shape index: {}]   ;;  %s3800_s2 = inlined_call_operand.hbm [shape: f32[8,128,128], index: 2, kind: input, shape index: {}]   ;;  %s3801_s3 = inlined_call_operand.hbm [shape: f32[8,128], index: 3, kind: output, shape index: {0}]   ;;  %s3802_s4 = inlined_call_operand.hbm [shape: f32[8,128], index: 4, kind: output, shape index: {1}]  }
   0x1   :  { %11 = vsyncpa [#allocation10], 0 }
   0x2   :  { %12 = vsyncpa [#allocation8], 0 }
   0x3   :  { %13 = vsyncpa [#allocation14], 0  ;;  %s2815_s15 = smov [#allocation9]  }
   0x4   :  { %s29_s16 = sshll.u32 %s2815_s15, 4  ;;  %s30_s16 = int_to_ptr.vmem [resolvable:$true] %s29_s16 }
   0x5   :  { %s2715_s17 = scalar_lea.vmem %s30_s16, 2048  ;;  %p2720_p1 = scmp.lt.s32.totalorder %s30_s16, %s30_s16 }
   0x6   :  { %p2716_p0 = scmp.ne.s32.totalorder %s30_s16, %s2715_s17  ;;  %p2721_p2 = scmp.lt.s32.totalorder %s2715_s17, %s2715_s17 }
   0x8   :  { %p2722_p3 = por %p2721_p2, %p2720_p1 }
   0xa   :  { %p2723_p4 = pnand %p2722_p3, %p2716_p0 }
   0xc   :  { %2726 = shalt.err (!%p2723_p4)
}
   0xd   :  { %s2816_s18 = smov 128   ;;  %s2817_s19 = smov 8  }
   0xe   :  { %35 = dma.hbm_to_vmem [thread:$0]  %s3799_s1, 2048, %s30_s16, [#allocation10], %s2816_s18, %s2816_s18, %s2817_s19  }
   0xf   :  { %s2818_s22 = smov [#allocation6]   ;;  %s2819_s24 = smov [#allocation11]  }
  0x10   :  { %s20_s23 = sshll.u32 %s2818_s22, 4  ;;  %s41_s25 = sshll.u32 %s2819_s24, 4  ;;  %s21_s23 = int_to_ptr.vmem [resolvable:$true] %s20_s23  ;;  %s42_s25 = int_to_ptr.vmem [resolvable:$true] %s41_s25 }
  0x11   :  { %s2735_s26 = scalar_lea.vmem %s21_s23, 128  ;;  %p2740_p6 = scmp.lt.s32.totalorder %s21_s23, %s21_s23 }
  0x12   :  { %p2736_p5 = scmp.ne.s32.totalorder %s21_s23, %s2735_s26  ;;  %p2741_p7 = scmp.lt.s32.totalorder %s2735_s26, %s2735_s26 }
  0x14   :  { %p2742_p8 = por %p2741_p7, %p2740_p6 }
  0x16   :  { %p2743_p9 = pnand %p2742_p8, %p2736_p5 }
  0x18   :  { %2746 = shalt.err (!%p2743_p9)
}
  0x19   :  { %23 = dma.hbm_to_vmem [thread:$0]  %s3798_s0, 128, %s21_s23, [#allocation7]  }
  0x1a   :  { %s2755_s29 = scalar_lea.vmem %s42_s25, 16384  ;;  %p2760_p11 = scmp.lt.s32.totalorder %s42_s25, %s42_s25 }
  0x1b   :  { %p2756_p10 = scmp.ne.s32.totalorder %s42_s25, %s2755_s29  ;;  %p2761_p12 = scmp.lt.s32.totalorder %s2755_s29, %s2755_s29 }
  0x1d   :  { %p2762_p13 = por %p2761_p12, %p2760_p11 }
  0x1f   :  { %p2763_p0 = pnand %p2762_p13, %p2756_p10 }
  0x21   :  { %2766 = shalt.err (!%p2763_p0)
}
  0x22   :  { %47 = dma.hbm_to_vmem [thread:$0]  %s3800_s2, 16384, %s42_s25, [#allocation10], %s2816_s18, %s2816_s18, %s2817_s19  }
  0x23   :  { %2807 = dma.done.wait [#allocation7], 128  }
  0x24   :  { %2808 = vsyncadd [#allocation7], 4294967168 }
  0x25   :  { %2809 = dma.done.wait [#allocation10], 18432  }
  0x26   :  { %2810 = vsyncadd [#allocation10], 4294948864  ;;  %v2820_v0 = vmov 0.0   ;;  %vm2821_vm0 = vmmov 0   ;;  %v77_v1 = vld [vmem:[#allocation9 + $0x78] sm:$0xff]  ;;  %v76_v2 = vld [vmem:[#allocation9 + $0x70] sm:$0xff]  ;;  %v287_v20 = vlaneseq }
  0x27   :  { %2522 = vmatprep.subr.mxu0 %v2820_v0  ;;  %2554 = vmatprep.mubr.msk.f32.mxu0 %vm2821_vm0, %v2820_v0  ;;  %v75_v3 = vld [vmem:[#allocation9 + $0x68] sm:$0xff]  ;;  %v74_v4 = vld [vmem:[#allocation9 + $0x60] sm:$0xff]  ;;  %v73_v5 = vld [vmem:[#allocation9 + $0x58] sm:$0xff]  ;;  %v2822_v18 = vmov 1966171168   ;;  %vm899_vm1 = vcmask 130112  }
  0x28   :  { %2523 = vmatpush3.msra.mxu0 %v77_v1  ;;  %v72_v6 = vld [vmem:[#allocation9 + $0x50] sm:$0xff]  ;;  %v71_v7 = vld [vmem:[#allocation9 + $0x48] sm:$0xff]  ;;  %v70_v8 = vld [vmem:[#allocation9 + $0x40] sm:$0xff]  ;;  %v285_v19 = vunpack.c.l.s4 %v2822_v18  ;;  %v2879_v22 = vshrl.u32 %v287_v20, 7  ;;  %vm906_vm2 = vcmask 195712   ;;  %vm913_vm3 = vcmask 261312  }
  0x29   :  { %2524 = vmatprep.subr.mxu0 %v2820_v0  ;;  %v69_v9 = vld [vmem:[#allocation9 + $0x38] sm:$0xff]  ;;  %v68_v10 = vld [vmem:[#allocation9 + $0x30] sm:$0xff]  ;;  %v67_v11 = vld [vmem:[#allocation9 + $0x28] sm:$0xff]  ;;  %vm920_vm4 = vcmask 326912   ;;  %vm927_vm5 = vcmask 392512   ;;  %vm934_vm6 = vcmask 458112  }
  0x2a   :  { %2525 = vmatpush3.msra.mxu0 %v76_v2  ;;  %v66_v12 = vld [vmem:[#allocation9 + $0x20] sm:$0xff]  ;;  %v65_v13 = vld [vmem:[#allocation9 + $0x18] sm:$0xff]  ;;  %v64_v14 = vld [vmem:[#allocation9 + $0x10] sm:$0xff]  ;;  %v286_v21 = vunpack.c.0.s8 %v285_v19  ;;  %3811 = vst [vmem:[#allocation19_spill] sm:$0xff] %v2879_v22  ;;  %v2883_v27 = vsub.s32 0, %v2879_v22  ;;  %vm941_vm7 = vcmask 523712  }
  0x2b   :  { %2526 = vmatprep.subr.mxu0 %v2820_v0  ;;  %v63_v15 = vld [vmem:[#allocation9 + $0x8] sm:$0xff]  ;;  %v62_v16 = vld [vmem:[#allocation9] sm:$0xff]  ;;  %v61_v17 = vld [vmem:[#allocation6] sm:$0xff]  ;;  %vm948_vm8 = vcmask 589312   ;;  %vm955_vm9 = vcmask 654912   ;;  %vm962_vm10 = vcmask 720512  }
  0x2c   :  { %2527 = vmatpush3.msra.mxu0 %v75_v3  ;;  %v289_v23 = vsub.s32 %v286_v21, %v2879_v22  ;;  %3812 = vst [vmem:[#allocation20_spill] sm:$0xff] %v2883_v27  ;;  %v155_v33 = vld [vmem:[#allocation11 + $0x10] sm:$0xff]  ;;  %v153_v34 = vld [vmem:[#allocation11] sm:$0xff]  ;;  %v156_v39 = vld [vmem:[#allocation11 + $0x18] sm:$0xff]  ;;  %vm969_vm11 = vcmask 786112   ;;  %vm976_vm12 = vcmask 851712  }
  0x2d   :  { %2528 = vmatprep.subr.mxu0 %v2820_v0  ;;  %v154_v40 = vld [vmem:[#allocation11 + $0x8] sm:$0xff]  ;;  %v157_v44 = vld [vmem:[#allocation11 + $0x20] sm:$0xff]  ;;  %v160_v47 = vld [vmem:[#allocation11 + $0x38] sm:$0xff]  ;;  %vm983_vm13 = vcmask 917312   ;;  %vm990_vm14 = vcmask 982912   ;;  %vm997_vm15 = vcmask 1048512  }
  0x2e   :  { %2529 = vmatpush3.msra.mxu0 %v74_v4  ;;  %v158_v43 = vld [vmem:[#allocation11 + $0x28] sm:$0xff]  ;;  %v159_v48 = vld [vmem:[#allocation11 + $0x30] sm:$0xff]  ;;  %v161_v52 = vld [vmem:[#allocation11 + $0x40] sm:$0xff]  ;;  %vm3803_vm0 = vcmask 1041409   ;;  %s2825_s0 = smov [#allocation13]  }
  0x2f   :  { %2530 = vmatprep.subr.mxu0 %v2820_v0  ;;  %v162_v51 = vld [vmem:[#allocation11 + $0x48] sm:$0xff]  ;;  %v164_v55 = vld [vmem:[#allocation11 + $0x58] sm:$0xff]  ;;  %v163_v56 = vld [vmem:[#allocation11 + $0x50] sm:$0xff]  ;;  %s2491_s2 = sshll.u32 %s2825_s0, 4  ;;  %s2492_s2 = int_to_ptr.vmem [resolvable:$true] %s2491_s2 }
  0x30   :  { %2531 = vmatpush3.msra.mxu0 %v73_v5  ;;  %v166_v60 = vld [vmem:[#allocation11 + $0x68] sm:$0xff]  ;;  %v165_v61 = vld [vmem:[#allocation11 + $0x60] sm:$0xff]  ;;  %v168_v2 = vld [vmem:[#allocation11 + $0x78] sm:$0xff]  ;;  %s2767_s5 = scalar_lea.vmem %s2492_s2, 128  ;;  %p2772_p2 = scmp.lt.s32.totalorder %s2492_s2, %s2492_s2 }
  0x31   :  { %2532 = vmatprep.subr.mxu0 %v2820_v0  ;;  %v167_v3 = vld [vmem:[#allocation11 + $0x70] sm:$0xff]  ;;  %v176_v19 = vld [vmem:[#allocation11 + $0xb8] sm:$0xff]  ;;  %p2768_p1 = scmp.ne.s32.totalorder %s2492_s2, %s2767_s5  ;;  %p2773_p3 = scmp.lt.s32.totalorder %s2767_s5, %s2767_s5 }
  0x32   :  { %2533 = vmatpush3.msra.mxu0 %v72_v6  ;;  %v175_v21 = vld [vmem:[#allocation11 + $0xb0] sm:$0xff] }
  0x33   :  { %2534 = vmatprep.subr.mxu0 %v2820_v0  ;;  %p2774_p4 = por %p2773_p3, %p2772_p2 }
  0x34   :  { %2535 = vmatpush3.msra.mxu0 %v71_v7  ;;  %v170_v7 = vld [vmem:[#allocation11 + $0x88] sm:$0xff] }
  0x35   :  { %2536 = vmatprep.subr.mxu0 %v2820_v0  ;;  %p2775_p5 = pnand %p2774_p4, %p2768_p1 }
  0x36   :  { %2537 = vmatpush3.msra.mxu0 %v70_v8  ;;  %v169_v8 = vld [vmem:[#allocation11 + $0x80] sm:$0xff] }
  0x37   :  { %2538 = vmatprep.subr.mxu0 %v2820_v0 }
  0x38   :  { %2539 = vmatpush3.msra.mxu0 %v69_v9 }
  0x39   :  { %2540 = vmatprep.subr.mxu0 %v2820_v0 }
  0x3a   :  { %2541 = vmatpush3.msra.mxu0 %v68_v10 }
  0x3b   :  { %2542 = vmatprep.subr.mxu0 %v2820_v0 }
  0x3c   :  { %2543 = vmatpush3.msra.mxu0 %v67_v11  ;;  %v172_v11 = vld [vmem:[#allocation11 + $0x98] sm:$0xff] }
  0x3d   :  { %2544 = vmatprep.subr.mxu0 %v2820_v0 }
  0x3e   :  { %2545 = vmatpush3.msra.mxu0 %v66_v12  ;;  %v171_v12 = vld [vmem:[#allocation11 + $0x90] sm:$0xff] }
  0x3f   :  { %2546 = vmatprep.subr.mxu0 %v2820_v0 }
  0x40   :  { %2547 = vmatpush3.msra.mxu0 %v65_v13 }
  0x41   :  { %2548 = vmatprep.subr.mxu0 %v2820_v0 }
  0x42   :  { %2549 = vmatpush3.msra.mxu0 %v64_v14 }
  0x43   :  { %2550 = vmatprep.subr.mxu0 %v2820_v0 }
  0x44   :  { %2551 = vmatpush3.msra.mxu0 %v63_v15  ;;  %v174_v15 = vld [vmem:[#allocation11 + $0xa8] sm:$0xff] }
  0x45   :  { %2552 = vmatprep.subr.mxu0 %v2820_v0 }
  0x46   :  { %2553 = vmatpush3.msra.mxu0 %v62_v16  ;;  %v173_v16 = vld [vmem:[#allocation11 + $0xa0] sm:$0xff] }
  0x47   :  { %2555 = vmatmul.mubr.f32.vlgmr.msra.gmra.mxu0 %v61_v17 }
 0x107   :  { %v144_v24 = vpop.f32.mrf.mxu0 }
 0x108   :  { %v283_v25 = vcombine.high %v144_v24, %v144_v24  ;;  %v290_v26 = vrot.slane %v144_v24, %v289_v23 }
 0x109   :  { %v2556_v28 = vpop.f32.mrf.mxu0 }
 0x10a   :  { %v297_v29 = vrot.slane %v283_v25, %v289_v23  ;;  %v2885_v30 = vrot.slane %v290_v26, %v289_v23  ;;  %v298_v57 = vcombine.high %v290_v26, %v290_v26  ;;  %v178_v25 = vld [vmem:[#allocation11 + $0xc8] sm:$0xff]  ;;  %v177_v26 = vld [vmem:[#allocation11 + $0xc0] sm:$0xff] }
 0x10c   :  { %v299_v31 = vcombine.high %v297_v29, %v297_v29  ;;  %v2887_v32 = vrot.slane %v297_v29, %v289_v23  ;;  %v335_v35 = vrot.slane %v2885_v30, %v2883_v27  ;;  %v2893_v62 = vrot.slane %v298_v57, %v289_v23 }
 0x10e   :  { %v2891_v36 = vrot.slane %v299_v31, %v289_v23  ;;  %v374_v37 = vmul.f32 %v335_v35, %v155_v33  ;;  %v372_v38 = vmul.f32 %v335_v35, %v153_v34  ;;  %v375_v41 = vmul.f32 %v335_v35, %v156_v39  ;;  %v180_v31 = vld [vmem:[#allocation11 + $0xd8] sm:$0xff]  ;;  %v179_v33 = vld [vmem:[#allocation11 + $0xd0] sm:$0xff] }
 0x10f   :  { %v373_v42 = vmul.f32 %v335_v35, %v154_v40  ;;  %v377_v45 = vmul.f32 %v335_v35, %v158_v43  ;;  %v376_v46 = vmul.f32 %v335_v35, %v157_v44  ;;  %v379_v49 = vmul.f32 %v335_v35, %v160_v47  ;;  %v183_v43 = vld [vmem:[#allocation11 + $0xf0] sm:$0xff]  ;;  %v186_v47 = vld [vmem:[#allocation11 + $0x108] sm:$0xff] }
 0x110   :  { %504 = vadd.xlane.f32.xlu1 %v374_v37  ;;  %500 = vadd.xlane.f32.xlu0 %v372_v38  ;;  %v378_v50 = vmul.f32 %v335_v35, %v159_v48  ;;  %v381_v53 = vmul.f32 %v335_v35, %v162_v51  ;;  %v380_v54 = vmul.f32 %v335_v35, %v161_v52  ;;  %v182_v37 = vld [vmem:[#allocation11 + $0xe8] sm:$0xff]  ;;  %v181_v38 = vld [vmem:[#allocation11 + $0xe0] sm:$0xff]  ;;  %v188_v51 = vld [vmem:[#allocation11 + $0x118] sm:$0xff] }
 0x111   :  { %v383_v58 = vmul.f32 %v335_v35, %v164_v55  ;;  %v382_v59 = vmul.f32 %v335_v35, %v163_v56  ;;  %v385_v63 = vmul.f32 %v335_v35, %v166_v60  ;;  %v384_v1 = vmul.f32 %v335_v35, %v165_v61  ;;  %v185_v48 = vld [vmem:[#allocation11 + $0x100] sm:$0xff]  ;;  %v187_v52 = vld [vmem:[#allocation11 + $0x110] sm:$0xff] }
 0x112   :  { %v339_v4 = vrot.slane %v2893_v62, %v2883_v27  ;;  %v387_v5 = vmul.f32 %v335_v35, %v168_v2  ;;  %v386_v6 = vmul.f32 %v335_v35, %v167_v3  ;;  %v328_v39 = vcombine.high %v2885_v30, %v2885_v30  ;;  %v189_v55 = vld [vmem:[#allocation11 + $0x120] sm:$0xff] }
 0x114   :  { %506 = vadd.xlane.f32.xlu1 %v375_v41  ;;  %502 = vadd.xlane.f32.xlu0 %v373_v42  ;;  %v389_v9 = vmul.f32 %v339_v4, %v170_v7  ;;  %v388_v10 = vmul.f32 %v339_v4, %v169_v8  ;;  %v391_v13 = vmul.f32 %v339_v4, %v172_v11  ;;  %v184_v42 = vld [vmem:[#allocation11 + $0xf8] sm:$0xff]  ;;  %v198_v8 = vld [vmem:[#allocation11 + $0x168] sm:$0xff] }
 0x115   :  { %v390_v14 = vmul.f32 %v339_v4, %v171_v12  ;;  %v393_v17 = vmul.f32 %v339_v4, %v174_v15  ;;  %v392_v18 = vmul.f32 %v339_v4, %v173_v16  ;;  %v395_v23 = vmul.f32 %v339_v4, %v176_v19  ;;  %v200_v12 = vld [vmem:[#allocation11 + $0x178] sm:$0xff] }
 0x116   :  { %v394_v24 = vmul.f32 %v339_v4, %v175_v21  ;;  %v397_v28 = vmul.f32 %v339_v4, %v178_v25  ;;  %v396_v29 = vmul.f32 %v339_v4, %v177_v26  ;;  %v399_v34 = vmul.f32 %v339_v4, %v180_v31 }
 0x117   :  { %v398_v35 = vmul.f32 %v339_v4, %v179_v33  ;;  %v401_v40 = vmul.f32 %v339_v4, %v182_v37  ;;  %v400_v41 = vmul.f32 %v339_v4, %v181_v38  ;;  %v343_v44 = vrot.slane %v328_v39, %v2883_v27  ;;  %v226_v39 = vld [vmem:[#allocation11 + $0x248] sm:$0xff] }
 0x118   :  { %510 = vadd.xlane.f32.xlu1 %v377_v45  ;;  %508 = vadd.xlane.f32.xlu0 %v376_v46  ;;  %v403_v45 = vmul.f32 %v339_v4, %v184_v42  ;;  %v402_v46 = vmul.f32 %v339_v4, %v183_v43  ;;  %v196_v4 = vld [vmem:[#allocation11 + $0x158] sm:$0xff] }
 0x119   :  { %v407_v30 = vmul.f32 %v343_v44, %v188_v51  ;;  %v408_v57 = vmul.f32 %v343_v44, %v189_v55  ;;  %v419_v15 = vmul.f32 %v343_v44, %v200_v12  ;;  %v228_v43 = vld [vmem:[#allocation11 + $0x258] sm:$0xff] }
 0x11c   :  { %514 = vadd.xlane.f32.xlu1 %v379_v49  ;;  %512 = vadd.xlane.f32.xlu0 %v378_v50  ;;  %v405_v49 = vmul.f32 %v343_v44, %v186_v47  ;;  %v404_v50 = vmul.f32 %v343_v44, %v185_v48  ;;  %v230_v47 = vld [vmem:[#allocation11 + $0x268] sm:$0xff]  ;;  %v229_v48 = vld [vmem:[#allocation11 + $0x260] sm:$0xff] }
 0x120   :  { %518 = vadd.xlane.f32.xlu1 %v381_v53  ;;  %516 = vadd.xlane.f32.xlu0 %v380_v54  ;;  %v406_v53 = vmul.f32 %v343_v44, %v187_v52  ;;  %v190_v54 = vld [vmem:[#allocation11 + $0x128] sm:$0xff]  ;;  %v232_v52 = vld [vmem:[#allocation11 + $0x278] sm:$0xff] }
 0x121   :  { %v409_v56 = vmul.f32 %v343_v44, %v190_v54 }
 0x124   :  { %522 = vadd.xlane.f32.xlu1 %v383_v58  ;;  %520 = vadd.xlane.f32.xlu0 %v382_v59  ;;  %v192_v58 = vld [vmem:[#allocation11 + $0x138] sm:$0xff]  ;;  %v191_v59 = vld [vmem:[#allocation11 + $0x130] sm:$0xff] }
 0x125   :  { %v411_v60 = vmul.f32 %v343_v44, %v192_v58  ;;  %v410_v61 = vmul.f32 %v343_v44, %v191_v59 }
 0x128   :  { %526 = vadd.xlane.f32.xlu1 %v385_v63  ;;  %524 = vadd.xlane.f32.xlu0 %v384_v1  ;;  %v194_v63 = vld [vmem:[#allocation11 + $0x148] sm:$0xff]  ;;  %v193_v1 = vld [vmem:[#allocation11 + $0x140] sm:$0xff] }
 0x129   :  { %v413_v2 = vmul.f32 %v343_v44, %v194_v63  ;;  %v412_v3 = vmul.f32 %v343_v44, %v193_v1  ;;  %v206_v1 = vld [vmem:[#allocation11 + $0x1a8] sm:$0xff] }
 0x12c   :  { %530 = vadd.xlane.f32.xlu1 %v387_v5  ;;  %528 = vadd.xlane.f32.xlu0 %v386_v6  ;;  %v195_v5 = vld [vmem:[#allocation11 + $0x150] sm:$0xff]  ;;  %v415_v6 = vmul.f32 %v343_v44, %v196_v4 }
 0x12d   :  { %v414_v7 = vmul.f32 %v343_v44, %v195_v5 }
 0x130   :  { %534 = vadd.xlane.f32.xlu1 %v389_v9  ;;  %532 = vadd.xlane.f32.xlu0 %v388_v10  ;;  %v197_v9 = vld [vmem:[#allocation11 + $0x160] sm:$0xff]  ;;  %v417_v10 = vmul.f32 %v343_v44, %v198_v8 }
 0x131   :  { %v416_v11 = vmul.f32 %v343_v44, %v197_v9  ;;  %v207_v9 = vld [vmem:[#allocation11 + $0x1b0] sm:$0xff] }
 0x134   :  { %538 = vadd.xlane.f32.xlu1 %v391_v13  ;;  %536 = vadd.xlane.f32.xlu0 %v390_v14  ;;  %v199_v13 = vld [vmem:[#allocation11 + $0x170] sm:$0xff]  ;;  %v351_v14 = vrot.slane %v2887_v32, %v2883_v27 }
 0x135   :  { %v418_v16 = vmul.f32 %v343_v44, %v199_v13  ;;  %v227_v44 = vld [vmem:[#allocation11 + $0x250] sm:$0xff] }
 0x136   :  { %v448_v51 = vmul.f32 %v351_v14, %v229_v48  ;;  %v451_v54 = vmul.f32 %v351_v14, %v232_v52 }
 0x138   :  { %542 = vadd.xlane.f32.xlu1 %v393_v17  ;;  %540 = vadd.xlane.f32.xlu0 %v392_v18  ;;  %v218_v17 = vld [vmem:[#allocation11 + $0x208] sm:$0xff]  ;;  %v217_v18 = vld [vmem:[#allocation11 + $0x200] sm:$0xff] }
 0x139   :  { %v437_v19 = vmul.f32 %v351_v14, %v218_v17  ;;  %v436_v21 = vmul.f32 %v351_v14, %v217_v18  ;;  %v209_v17 = vld [vmem:[#allocation11 + $0x1c0] sm:$0xff] }
 0x13c   :  { %546 = vadd.xlane.f32.xlu1 %v395_v23  ;;  %544 = vadd.xlane.f32.xlu0 %v394_v24  ;;  %v220_v23 = vld [vmem:[#allocation11 + $0x218] sm:$0xff]  ;;  %v219_v24 = vld [vmem:[#allocation11 + $0x210] sm:$0xff] }
 0x13d   :  { %v439_v25 = vmul.f32 %v351_v14, %v220_v23  ;;  %v438_v26 = vmul.f32 %v351_v14, %v219_v24  ;;  %v212_v24 = vld [vmem:[#allocation11 + $0x1d8] sm:$0xff] }
 0x140   :  { %550 = vadd.xlane.f32.xlu1 %v397_v28  ;;  %548 = vadd.xlane.f32.xlu0 %v396_v29  ;;  %v222_v28 = vld [vmem:[#allocation11 + $0x228] sm:$0xff]  ;;  %v221_v29 = vld [vmem:[#allocation11 + $0x220] sm:$0xff] }
 0x141   :  { %v441_v31 = vmul.f32 %v351_v14, %v222_v28  ;;  %v440_v33 = vmul.f32 %v351_v14, %v221_v29 }
 0x144   :  { %554 = vadd.xlane.f32.xlu1 %v399_v34  ;;  %552 = vadd.xlane.f32.xlu0 %v398_v35  ;;  %v224_v34 = vld [vmem:[#allocation11 + $0x238] sm:$0xff]  ;;  %v223_v35 = vld [vmem:[#allocation11 + $0x230] sm:$0xff] }
 0x145   :  { %v443_v37 = vmul.f32 %v351_v14, %v224_v34  ;;  %v442_v38 = vmul.f32 %v351_v14, %v223_v35 }
 0x148   :  { %558 = vadd.xlane.f32.xlu1 %v401_v40  ;;  %556 = vadd.xlane.f32.xlu0 %v400_v41  ;;  %v225_v40 = vld [vmem:[#allocation11 + $0x240] sm:$0xff]  ;;  %v445_v41 = vmul.f32 %v351_v14, %v226_v39 }
 0x149   :  { %v444_v42 = vmul.f32 %v351_v14, %v225_v40 }
 0x14c   :  { %562 = vadd.xlane.f32.xlu1 %v403_v45  ;;  %560 = vadd.xlane.f32.xlu0 %v402_v46  ;;  %v447_v45 = vmul.f32 %v351_v14, %v228_v43  ;;  %v446_v46 = vmul.f32 %v351_v14, %v227_v44 }
 0x150   :  { %566 = vadd.xlane.f32.xlu1 %v405_v49  ;;  %564 = vadd.xlane.f32.xlu0 %v404_v50  ;;  %v330_v49 = vcombine.high %v2893_v62, %v2893_v62  ;;  %v449_v50 = vmul.f32 %v351_v14, %v230_v47  ;;  %v204_v62 = vld [vmem:[#allocation11 + $0x198] sm:$0xff] }
 0x154   :  { %570 = vadd.xlane.f32.xlu1 %v407_v30  ;;  %568 = vadd.xlane.f32.xlu0 %v406_v53  ;;  %v231_v30 = vld [vmem:[#allocation11 + $0x270] sm:$0xff]  ;;  %v2905_v53 = vrot.slane %v330_v49, %v2883_v27 }
 0x155   :  { %v450_v55 = vmul.f32 %v351_v14, %v231_v30 }
 0x156   :  { %v425_v4 = vmul.f32 %v2905_v53, %v206_v1  ;;  %v426_v14 = vmul.f32 %v2905_v53, %v207_v9  ;;  %v428_v29 = vmul.f32 %v2905_v53, %v209_v17  ;;  %v216_v1 = vld [vmem:[#allocation11 + $0x1f8] sm:$0xff]  ;;  %v2981_v9 = vrot.slane %v2891_v36, %v2883_v27 }
 0x158   :  { %574 = vadd.xlane.f32.xlu1 %v409_v56  ;;  %572 = vadd.xlane.f32.xlu0 %v408_v57  ;;  %v202_v56 = vld [vmem:[#allocation11 + $0x188] sm:$0xff]  ;;  %v201_v57 = vld [vmem:[#allocation11 + $0x180] sm:$0xff] }
 0x159   :  { %v421_v58 = vmul.f32 %v2905_v53, %v202_v56  ;;  %v420_v59 = vmul.f32 %v2905_v53, %v201_v57 }
 0x15c   :  { %578 = vadd.xlane.f32.xlu1 %v411_v60  ;;  %576 = vadd.xlane.f32.xlu0 %v410_v61  ;;  %v203_v60 = vld [vmem:[#allocation11 + $0x190] sm:$0xff]  ;;  %v423_v61 = vmul.f32 %v2905_v53, %v204_v62 }
 0x15d   :  { %v422_v63 = vmul.f32 %v2905_v53, %v203_v60 }
 0x160   :  { %582 = vadd.xlane.f32.xlu1 %v413_v2  ;;  %580 = vadd.xlane.f32.xlu0 %v412_v3  ;;  %v205_v2 = vld [vmem:[#allocation11 + $0x1a0] sm:$0xff]  ;;  %v2912_v3 = vand.u32 127, %v287_v20 }
 0x161   :  { %v424_v5 = vmul.f32 %v2905_v53, %v205_v2  ;;  %v215_v2 = vld [vmem:[#allocation11 + $0x1f0] sm:$0xff] }
 0x162   :  { %3813 = vst [vmem:[#allocation21_spill] sm:$0xff] %v2912_v3  ;;  %v901_v8 = vadd.s32 4294967280, %v2912_v3  ;;  %v2921_v20 = vsub.s32 %v2912_v3, %v2879_v22  ;;  %v922_v18 = vadd.s32 4294967256, %v2912_v3  ;;  %v929_v34 = vadd.s32 4294967248, %v2912_v3 }
 0x163   :  { %v950_v52 = vadd.s32 4294967224, %v2912_v3  ;;  %v943_v56 = vadd.s32 4294967232, %v2912_v3 }
 0x164   :  { %586 = vadd.xlane.f32.xlu1 %v415_v6  ;;  %584 = vadd.xlane.f32.xlu0 %v414_v7  ;;  %v208_v6 = vld [vmem:[#allocation11 + $0x1b8] sm:$0xff]  ;;  %v894_v7 = vadd.s32 4294967288, %v2912_v3  ;;  %v2958_v49 = vsub.s32 %v929_v34, %v2879_v22 }
 0x165   :  { %v427_v13 = vmul.f32 %v2905_v53, %v208_v6 }
 0x168   :  { %590 = vadd.xlane.f32.xlu1 %v417_v10  ;;  %588 = vadd.xlane.f32.xlu0 %v416_v11  ;;  %v908_v10 = vadd.s32 4294967272, %v2912_v3 }
 0x16a   :  { %v2934_v23 = vsub.s32 %v908_v10, %v2879_v22 }
 0x16c   :  { %594 = vadd.xlane.f32.xlu1 %v419_v15  ;;  %592 = vadd.xlane.f32.xlu0 %v418_v16  ;;  %v2926_v15 = vsub.s32 %v894_v7, %v2879_v22  ;;  %v210_v16 = vld [vmem:[#allocation11 + $0x1c8] sm:$0xff]  ;;  %v2976_v7 = vsub.s32 %v943_v56, %v2879_v22 }
 0x16d   :  { %v429_v28 = vmul.f32 %v2905_v53, %v210_v16 }
 0x170   :  { %630 = vadd.xlane.f32.xlu1 %v437_v19  ;;  %628 = vadd.xlane.f32.xlu0 %v436_v21  ;;  %v915_v19 = vadd.s32 4294967264, %v2912_v3  ;;  %v2931_v21 = vsub.s32 %v901_v8, %v2879_v22  ;;  %v957_v8 = vadd.s32 4294967216, %v2912_v3 }
 0x172   :  { %v2946_v39 = vsub.s32 %v915_v19, %v2879_v22  ;;  %v233_v19 = vld [vmem:[#allocation11 + $0x280] sm:$0xff] }
 0x174   :  { %634 = vadd.xlane.f32.xlu1 %v439_v25  ;;  %632 = vadd.xlane.f32.xlu0 %v438_v26 }
 0x178   :  { %638 = vadd.xlane.f32.xlu1 %v441_v31  ;;  %636 = vadd.xlane.f32.xlu0 %v440_v33  ;;  %v211_v31 = vld [vmem:[#allocation11 + $0x1d0] sm:$0xff]  ;;  %v936_v33 = vadd.s32 4294967240, %v2912_v3 }
 0x179   :  { %v430_v44 = vmul.f32 %v2905_v53, %v211_v31 }
 0x17a   :  { %v2955_v48 = vsub.s32 %v936_v33, %v2879_v22  ;;  %v452_v33 = vmul.f32 %v2981_v9, %v233_v19 }
 0x17c   :  { %642 = vadd.xlane.f32.xlu1 %v443_v37  ;;  %640 = vadd.xlane.f32.xlu0 %v442_v38  ;;  %v2943_v38 = vsub.s32 %v922_v18, %v2879_v22  ;;  %v234_v18 = vld [vmem:[#allocation11 + $0x288] sm:$0xff] }
 0x17d   :  { %v453_v31 = vmul.f32 %v2981_v9, %v234_v18 }
 0x180   :  { %646 = vadd.xlane.f32.xlu1 %v445_v41  ;;  %644 = vadd.xlane.f32.xlu0 %v444_v42  ;;  %v431_v41 = vmul.f32 %v2905_v53, %v212_v24  ;;  %v978_v24 = vadd.s32 4294967192, %v2912_v3 }
 0x184   :  { %650 = vadd.xlane.f32.xlu1 %v447_v45  ;;  %648 = vadd.xlane.f32.xlu0 %v446_v46 }
 0x188   :  { %654 = vadd.xlane.f32.xlu1 %v449_v50  ;;  %652 = vadd.xlane.f32.xlu0 %v448_v51  ;;  %v214_v50 = vld [vmem:[#allocation11 + $0x1e8] sm:$0xff]  ;;  %v213_v51 = vld [vmem:[#allocation11 + $0x1e0] sm:$0xff] }
 0x18c   :  { %658 = vadd.xlane.f32.xlu1 %v451_v54  ;;  %656 = vadd.xlane.f32.xlu0 %v450_v55 }
 0x190   :  { %598 = vadd.xlane.f32.xlu1 %v421_v58  ;;  %596 = vadd.xlane.f32.xlu0 %v420_v59  ;;  %v433_v58 = vmul.f32 %v2905_v53, %v214_v50  ;;  %v432_v59 = vmul.f32 %v2905_v53, %v213_v51 }
 0x194   :  { %602 = vadd.xlane.f32.xlu1 %v423_v61  ;;  %600 = vadd.xlane.f32.xlu0 %v422_v63  ;;  %v2970_v63 = vsub.s32 %v950_v52, %v2879_v22 }
 0x198   :  { %606 = vadd.xlane.f32.xlu1 %v425_v4  ;;  %604 = vadd.xlane.f32.xlu0 %v424_v5  ;;  %v964_v4 = vadd.s32 4294967208, %v2912_v3 }
 0x199   :  { %v505_v11 = vpop.xlane.xlu1 %504  ;;  %v501_v12 = vpop.xlane.xlu0 %500 }
 0x19a   :  { %v893_v35 = vrot.slane %v501_v12, %v2921_v20  ;;  %v905_v40 = vrot.slane %v505_v11, %v2931_v21  ;;  %v435_v11 = vmul.f32 %v2905_v53, %v216_v1  ;;  %v434_v12 = vmul.f32 %v2905_v53, %v215_v2 }
 0x19b   :  { %v2988_v17 = vsub.s32 %v964_v4, %v2879_v22  ;;  %v971_v53 = vadd.s32 4294967200, %v2912_v3 }
 0x19c   :  { %610 = vadd.xlane.f32.xlu1 %v427_v13  ;;  %608 = vadd.xlane.f32.xlu0 %v426_v14 }
 0x19d   :  { %v507_v25 = vpop.xlane.xlu1 %506  ;;  %v503_v26 = vpop.xlane.xlu0 %502 }
 0x19e   :  { %v898_v37 = vrot.slane %v503_v26, %v2926_v15  ;;  %v912_v42 = vrot.slane %v507_v25, %v2934_v23 }
 0x1a0   :  { %v900_v43 = vsel %vm899_vm1, %v898_v37, %v893_v35  ;;  %614 = vadd.xlane.f32.xlu1 %v429_v28  ;;  %612 = vadd.xlane.f32.xlu0 %v428_v29  ;;  %v2994_v28 = vsub.s32 %v957_v8, %v2879_v22 }
 0x1a1   :  { %v907_v45 = vsel %vm906_vm2, %v905_v40, %v900_v43  ;;  %v511_v46 = vpop.xlane.xlu1 %510  ;;  %v509_v47 = vpop.xlane.xlu0 %508  ;;  %v3002_v40 = vsub.s32 %v978_v24, %v2879_v22 }
 0x1a2   :  { %v926_v30 = vrot.slane %v511_v46, %v2943_v38  ;;  %v914_v54 = vsel %vm913_vm3, %v912_v42, %v907_v45  ;;  %v919_v55 = vrot.slane %v509_v47, %v2946_v39  ;;  %v992_v42 = vadd.s32 4294967176, %v2912_v3  ;;  %v235_v46 = vld [vmem:[#allocation11 + $0x290] sm:$0xff] }
 0x1a3   :  { %v3008_v45 = vsub.s32 %v971_v53, %v2879_v22  ;;  %v985_v47 = vadd.s32 4294967184, %v2912_v3 }
 0x1a4   :  { %v921_v57 = vsel %vm920_vm4, %v919_v55, %v914_v54  ;;  %618 = vadd.xlane.f32.xlu1 %v431_v41  ;;  %616 = vadd.xlane.f32.xlu0 %v430_v44  ;;  %v236_v41 = vld [vmem:[#allocation11 + $0x298] sm:$0xff]  ;;  %v454_v55 = vmul.f32 %v2981_v9, %v235_v46  ;;  %v3016_v56 = vsub.s32 %v992_v42, %v2879_v22  ;;  %v249_v46 = vld [vmem:[#allocation11 + $0x300] sm:$0xff] }
 0x1a5   :  { %v515_v62 = vpop.xlane.xlu1 %514  ;;  %v928_v60 = vsel %vm927_vm5, %v926_v30, %v921_v57  ;;  %v513_v61 = vpop.xlane.xlu0 %512  ;;  %v455_v51 = vmul.f32 %v2981_v9, %v236_v41 }
 0x1a6   :  { %v940_v5 = vrot.slane %v515_v62, %v2955_v48  ;;  %v933_v6 = vrot.slane %v513_v61, %v2958_v49  ;;  %3814 = vst [vmem:[#allocation22_spill] sm:$0xff] %v3016_v56  ;;  %v238_v62 = vld [vmem:[#allocation11 + $0x2a8] sm:$0xff] }
 0x1a8   :  { %v935_v10 = vsel %vm934_vm6, %v933_v6, %v928_v60  ;;  %622 = vadd.xlane.f32.xlu1 %v433_v58  ;;  %620 = vadd.xlane.f32.xlu0 %v432_v59  ;;  %v3021_v59 = vsub.s32 %v985_v47, %v2879_v22  ;;  %v237_v60 = vld [vmem:[#allocation11 + $0x2a0] sm:$0xff] }
 0x1a9   :  { %v519_v13 = vpop.xlane.xlu1 %518  ;;  %v942_v14 = vsel %vm941_vm7, %v940_v5, %v935_v10  ;;  %v517_v16 = vpop.xlane.xlu0 %516  ;;  %v457_v5 = vmul.f32 %v2981_v9, %v238_v62  ;;  %v456_v10 = vmul.f32 %v2981_v9, %v237_v60  ;;  %v251_v62 = vld [vmem:[#allocation11 + $0x310] sm:$0xff] }
 0x1aa   :  { %v954_v25 = vrot.slane %v519_v13, %v2970_v63  ;;  %v947_v26 = vrot.slane %v517_v16, %v2976_v7 }
 0x1ac   :  { %v949_v29 = vsel %vm948_vm8, %v947_v26, %v942_v14  ;;  %626 = vadd.xlane.f32.xlu1 %v435_v11  ;;  %624 = vadd.xlane.f32.xlu0 %v434_v12  ;;  %v240_v11 = vld [vmem:[#allocation11 + $0x2b8] sm:$0xff]  ;;  %v239_v12 = vld [vmem:[#allocation11 + $0x2b0] sm:$0xff]  ;;  %v329_v14 = vcombine.high %v2887_v32, %v2887_v32 }
 0x1ad   :  { %v523_v34 = vpop.xlane.xlu1 %522  ;;  %v956_v35 = vsel %vm955_vm9, %v954_v25, %v949_v29  ;;  %v521_v37 = vpop.xlane.xlu0 %520  ;;  %v459_v26 = vmul.f32 %v2981_v9, %v240_v11  ;;  %v458_v53 = vmul.f32 %v2981_v9, %v239_v12  ;;  %v242_v29 = vld [vmem:[#allocation11 + $0x2c8] sm:$0xff] }
 0x1ae   :  { %v968_v43 = vrot.slane %v523_v34, %v2988_v17  ;;  %v961_v44 = vrot.slane %v521_v37, %v2994_v28  ;;  %v3041_v32 = vrot.slane %v329_v14, %v2883_v27  ;;  %v461_v42 = vmul.f32 %v2981_v9, %v242_v29  ;;  %v258_v11 = vld [vmem:[#allocation11 + $0x348] sm:$0xff]  ;;  %v244_v29 = vld [vmem:[#allocation11 + $0x2d8] sm:$0xff] }
 0x1b0   :  { %v963_v50 = vsel %vm962_vm10, %v961_v44, %v956_v35  ;;  %662 = vadd.xlane.f32.xlu1 %v453_v31  ;;  %660 = vadd.xlane.f32.xlu0 %v452_v33  ;;  %v241_v31 = vld [vmem:[#allocation11 + $0x2c0] sm:$0xff]  ;;  %v250_v44 = vld [vmem:[#allocation11 + $0x308] sm:$0xff] }
 0x1b1   :  { %v527_v52 = vpop.xlane.xlu1 %526  ;;  %v970_v30 = vsel %vm969_vm11, %v968_v43, %v963_v50  ;;  %v525_v54 = vpop.xlane.xlu0 %524  ;;  %v460_v43 = vmul.f32 %v2981_v9, %v241_v31 }
 0x1b2   :  { %v982_v57 = vrot.slane %v527_v52, %v3002_v40  ;;  %v975_v58 = vrot.slane %v525_v54, %v3008_v45 }
 0x1b4   :  { %v977_v61 = vsel %vm976_vm12, %v975_v58, %v970_v30  ;;  %666 = vadd.xlane.f32.xlu1 %v455_v51  ;;  %664 = vadd.xlane.f32.xlu0 %v454_v55  ;;  %v469_v55 = vmul.f32 %v3041_v32, %v250_v44  ;;  %v252_v58 = vld [vmem:[#allocation11 + $0x318] sm:$0xff]  ;;  %v255_v44 = vld [vmem:[#allocation11 + $0x330] sm:$0xff] }
 0x1b5   :  { %v531_v1 = vpop.xlane.xlu1 %530  ;;  %v984_v2 = vsel %vm983_vm13, %v982_v57, %v977_v61  ;;  %v529_v4 = vpop.xlane.xlu0 %528  ;;  %v468_v57 = vmul.f32 %v3041_v32, %v249_v46  ;;  %v260_v46 = vld [vmem:[#allocation11 + $0x358] sm:$0xff] }
 0x1b6   :  { %v996_v6 = vrot.slane %v531_v1, %v3016_v56  ;;  %v989_v8 = vrot.slane %v529_v4, %v3021_v59 }
 0x1b8   :  { %v991_v13 = vsel %vm990_vm14, %v989_v8, %v984_v2  ;;  %670 = vadd.xlane.f32.xlu1 %v457_v5  ;;  %668 = vadd.xlane.f32.xlu0 %v456_v10  ;;  %v470_v8 = vmul.f32 %v3041_v32, %v251_v62  ;;  %v253_v10 = vld [vmem:[#allocation11 + $0x320] sm:$0xff]  ;;  %v246_v62 = vld [vmem:[#allocation11 + $0x2e8] sm:$0xff] }
 0x1b9   :  { %v3033_v16 = vsel %vm997_vm15, %v996_v6, %v991_v13  ;;  %v535_v18 = vpop.xlane.xlu1 %534  ;;  %v533_v19 = vpop.xlane.xlu0 %532  ;;  %v471_v6 = vmul.f32 %v3041_v32, %v252_v58  ;;  %v256_v58 = vld [vmem:[#allocation11 + $0x338] sm:$0xff] }
 0x1ba   :  { %v1006_v24 = vrot.slane %v535_v18, %v2926_v15  ;;  %v1002_v25 = vrot.slane %v533_v19, %v2921_v20 }
 0x1bc   :  { %v1007_v33 = vsel %vm899_vm1, %v1006_v24, %v1002_v25  ;;  %674 = vadd.xlane.f32.xlu1 %v459_v26  ;;  %672 = vadd.xlane.f32.xlu0 %v458_v53  ;;  %v472_v25 = vmul.f32 %v3041_v32, %v253_v10  ;;  %v477_v26 = vmul.f32 %v3041_v32, %v258_v11  ;;  %v254_v53 = vld [vmem:[#allocation11 + $0x328] sm:$0xff]  ;;  %v257_v10 = vld [vmem:[#allocation11 + $0x340] sm:$0xff] }
 0x1bd   :  { %v539_v34 = vpop.xlane.xlu1 %538  ;;  %v537_v35 = vpop.xlane.xlu0 %536  ;;  %v262_v11 = vld [vmem:[#allocation11 + $0x368] sm:$0xff] }
 0x1be   :  { %v1016_v37 = vrot.slane %v539_v34, %v2934_v23  ;;  %v1011_v41 = vrot.slane %v537_v35, %v2931_v21 }
 0x1c0   :  { %v1012_v47 = vsel %vm906_vm2, %v1011_v41, %v1007_v33  ;;  %678 = vadd.xlane.f32.xlu1 %v461_v42  ;;  %676 = vadd.xlane.f32.xlu0 %v460_v43  ;;  %v473_v42 = vmul.f32 %v3041_v32, %v254_v53  ;;  %v463_v43 = vmul.f32 %v2981_v9, %v244_v29  ;;  %v243_v53 = vld [vmem:[#allocation11 + $0x2d0] sm:$0xff]  ;;  %v248_v29 = vld [vmem:[#allocation11 + $0x2f8] sm:$0xff] }
 0x1c1   :  { %v543_v50 = vpop.xlane.xlu1 %542  ;;  %v1017_v51 = vsel %vm913_vm3, %v1016_v37, %v1012_v47  ;;  %v541_v52 = vpop.xlane.xlu0 %540 }
 0x1c2   :  { %v1026_v30 = vrot.slane %v543_v50, %v2943_v38  ;;  %v1021_v54 = vrot.slane %v541_v52, %v2946_v39 }
 0x1c4   :  { %v1022_v60 = vsel %vm920_vm4, %v1021_v54, %v1017_v51  ;;  %694 = vadd.xlane.f32.xlu1 %v469_v55  ;;  %692 = vadd.xlane.f32.xlu0 %v468_v57  ;;  %v474_v55 = vmul.f32 %v3041_v32, %v255_v44  ;;  %v479_v57 = vmul.f32 %v3041_v32, %v260_v46  ;;  %v245_v46 = vld [vmem:[#allocation11 + $0x2e0] sm:$0xff] }
 0x1c5   :  { %v547_v61 = vpop.xlane.xlu1 %546  ;;  %v1027_v1 = vsel %vm927_vm5, %v1026_v30, %v1022_v60  ;;  %v545_v2 = vpop.xlane.xlu0 %544 }
 0x1c6   :  { %v1036_v4 = vrot.slane %v547_v61, %v2955_v48  ;;  %v1031_v5 = vrot.slane %v545_v2, %v2958_v49 }
 0x1c8   :  { %v1032_v12 = vsel %vm934_vm6, %v1031_v5, %v1027_v1  ;;  %698 = vadd.xlane.f32.xlu1 %v471_v6  ;;  %696 = vadd.xlane.f32.xlu0 %v470_v8  ;;  %v475_v6 = vmul.f32 %v3041_v32, %v256_v58  ;;  %v465_v8 = vmul.f32 %v2981_v9, %v246_v62 }
 0x1c9   :  { %v551_v13 = vpop.xlane.xlu1 %550  ;;  %v1037_v14 = vsel %vm941_vm7, %v1036_v4, %v1032_v12  ;;  %v549_v18 = vpop.xlane.xlu0 %548 }
 0x1ca   :  { %v1046_v19 = vrot.slane %v551_v13, %v2970_v63  ;;  %v1041_v24 = vrot.slane %v549_v18, %v2976_v7 }
 0x1cc   :  { %v1042_v31 = vsel %vm948_vm8, %v1041_v24, %v1037_v14  ;;  %700 = vadd.xlane.f32.xlu1 %v472_v25  ;;  %710 = vadd.xlane.f32.xlu0 %v477_v26  ;;  %v476_v25 = vmul.f32 %v3041_v32, %v257_v10  ;;  %v481_v26 = vmul.f32 %v3041_v32, %v262_v11  ;;  %v270_v10 = vld [vmem:[#allocation11 + $0x3a8] sm:$0xff] }
 0x1cd   :  { %v555_v33 = vpop.xlane.xlu1 %554  ;;  %v1047_v34 = vsel %vm955_vm9, %v1046_v19, %v1042_v31  ;;  %v553_v35 = vpop.xlane.xlu0 %552  ;;  %v331_v19 = vcombine.high %v2891_v36, %v2891_v36  ;;  %v462_v36 = vmul.f32 %v2981_v9, %v243_v53 }
 0x1ce   :  { %v1056_v37 = vrot.slane %v555_v33, %v2988_v17  ;;  %v1051_v41 = vrot.slane %v553_v35, %v2994_v28  ;;  %v259_v35 = vld [vmem:[#allocation11 + $0x350] sm:$0xff] }
 0x1d0   :  { %v1052_v47 = vsel %vm962_vm10, %v1051_v41, %v1047_v34  ;;  %702 = vadd.xlane.f32.xlu1 %v473_v42  ;;  %682 = vadd.xlane.f32.xlu0 %v463_v43  ;;  %v3102_v34 = vrot.slane %v331_v19, %v2883_v27  ;;  %v478_v43 = vmul.f32 %v3041_v32, %v259_v35  ;;  %v273_v35 = vld [vmem:[#allocation11 + $0x3c0] sm:$0xff] }
 0x1d1   :  { %v559_v50 = vpop.xlane.xlu1 %558  ;;  %v1057_v51 = vsel %vm969_vm11, %v1056_v37, %v1052_v47  ;;  %v557_v52 = vpop.xlane.xlu0 %556  ;;  %v266_v37 = vld [vmem:[#allocation11 + $0x388] sm:$0xff]  ;;  %v267_v47 = vld [vmem:[#allocation11 + $0x390] sm:$0xff] }
 0x1d2   :  { %v1066_v30 = vrot.slane %v559_v50, %v3002_v40  ;;  %v1061_v54 = vrot.slane %v557_v52, %v3008_v45  ;;  %v485_v44 = vmul.f32 %v3102_v34, %v266_v37  ;;  %v464_v52 = vmul.f32 %v2981_v9, %v245_v46 }
 0x1d3   :  { %v489_v19 = vmul.f32 %v3102_v34, %v270_v10  ;;  %v492_v46 = vmul.f32 %v3102_v34, %v273_v35  ;;  %v278_v10 = vld [vmem:[#allocation11 + $0x3e8] sm:$0xff] }
 0x1d4   :  { %v1062_v60 = vsel %vm976_vm12, %v1061_v54, %v1057_v51  ;;  %704 = vadd.xlane.f32.xlu1 %v474_v55  ;;  %714 = vadd.xlane.f32.xlu0 %v479_v57  ;;  %v261_v54 = vld [vmem:[#allocation11 + $0x360] sm:$0xff]  ;;  %v268_v55 = vld [vmem:[#allocation11 + $0x398] sm:$0xff] }
 0x1d5   :  { %v563_v61 = vpop.xlane.xlu1 %562  ;;  %v1067_v1 = vsel %vm983_vm13, %v1066_v30, %v1062_v60  ;;  %v561_v2 = vpop.xlane.xlu0 %560  ;;  %v486_v30 = vmul.f32 %v3102_v34, %v267_v47  ;;  %v480_v62 = vmul.f32 %v3041_v32, %v261_v54  ;;  %v487_v60 = vmul.f32 %v3102_v34, %v268_v55  ;;  %v274_v47 = vld [vmem:[#allocation11 + $0x3c8] sm:$0xff] }
 0x1d6   :  { %v1076_v4 = vrot.slane %v563_v61, %v3016_v56  ;;  %v1071_v5 = vrot.slane %v561_v2, %v3021_v59  ;;  %v247_v61 = vld [vmem:[#allocation11 + $0x2f0] sm:$0xff]  ;;  %v493_v55 = vmul.f32 %v3102_v34, %v274_v47 }
 0x1d8   :  { %v1072_v12 = vsel %vm990_vm14, %v1071_v5, %v1067_v1  ;;  %706 = vadd.xlane.f32.xlu1 %v475_v6  ;;  %686 = vadd.xlane.f32.xlu0 %v465_v8  ;;  %v269_v1 = vld [vmem:[#allocation11 + $0x3a0] sm:$0xff]  ;;  %v466_v5 = vmul.f32 %v2981_v9, %v247_v61  ;;  %v263_v8 = vld [vmem:[#allocation11 + $0x370] sm:$0xff] }
 0x1d9   :  { %v1077_v13 = vsel %vm997_vm15, %v1076_v4, %v1072_v12  ;;  %v3085_v14 = vpop.xlane.xlu1 %566  ;;  %v3087_v18 = vpop.xlane.xlu0 %564  ;;  %v488_v6 = vmul.f32 %v3102_v34, %v269_v1  ;;  %v277_v61 = vld [vmem:[#allocation11 + $0x3e0] sm:$0xff] }
 0x1da   :  { %v3093_v24 = vsel %vm3803_vm0, %v1077_v13, %v3033_v16  ;;  %v467_v16 = vmul.f32 %v2981_v9, %v248_v29  ;;  %v482_v13 = vmul.f32 %v3041_v32, %v263_v8  ;;  %v496_v8 = vmul.f32 %v3102_v34, %v277_v61 }
 0x1db   :  { %3815 = vst [vmem:[#allocation23_spill] sm:$0xff] %v3093_v24  ;;  %vm149_vm0 = vcmask 7168  }
 0x1dc   :  { %708 = vadd.xlane.f32.xlu1 %v476_v25  ;;  %718 = vadd.xlane.f32.xlu0 %v481_v26  ;;  %v271_v25 = vld [vmem:[#allocation11 + $0x3b0] sm:$0xff]  ;;  %v265_v26 = vld [vmem:[#allocation11 + $0x380] sm:$0xff]  ;;  %151 = vst.msk [vmem:[#allocation4] sm:$0xff] %vm149_vm0, %v2820_v0 }
 0x1dd   :  { %v3097_v31 = vpop.xlane.xlu1 %570  ;;  %v3099_v33 = vpop.xlane.xlu0 %568  ;;  %v490_v29 = vmul.f32 %v3102_v34, %v271_v25 }
 0x1e0   :  { %680 = vadd.xlane.f32.xlu1 %v462_v36  ;;  %690 = vadd.xlane.f32.xlu0 %v467_v16  ;;  %v484_v36 = vmul.f32 %v3102_v34, %v265_v26  ;;  %v272_v16 = vld [vmem:[#allocation11 + $0x3b8] sm:$0xff]  ;;  %v497_v26 = vmul.f32 %v3102_v34, %v278_v10 }
 0x1e1   :  { %v3106_v41 = vpop.xlane.xlu1 %574  ;;  %v3108_v42 = vpop.xlane.xlu0 %572 }
 0x1e4   :  { %712 = vadd.xlane.f32.xlu1 %v478_v43  ;;  %726 = vadd.xlane.f32.xlu0 %v485_v44  ;;  %v491_v44 = vmul.f32 %v3102_v34, %v272_v16  ;;  %v280_v16 = vld [vmem:[#allocation11 + $0x3f8] sm:$0xff] }
 0x1e5   :  { %v3112_v50 = vpop.xlane.xlu1 %578  ;;  %v3114_v51 = vpop.xlane.xlu0 %576  ;;  %v499_v47 = vmul.f32 %v3102_v34, %v280_v16 }
 0x1e8   :  { %684 = vadd.xlane.f32.xlu1 %v464_v52  ;;  %728 = vadd.xlane.f32.xlu0 %v486_v30  ;;  %v275_v52 = vld [vmem:[#allocation11 + $0x3d0] sm:$0xff] }
 0x1e9   :  { %v3118_v57 = vpop.xlane.xlu1 %582  ;;  %v3120_v58 = vpop.xlane.xlu0 %580 }
 0x1ec   :  { %716 = vadd.xlane.f32.xlu1 %v480_v62  ;;  %730 = vadd.xlane.f32.xlu0 %v487_v60  ;;  %v494_v62 = vmul.f32 %v3102_v34, %v275_v52  ;;  %v276_v60 = vld [vmem:[#allocation11 + $0x3d8] sm:$0xff] }
 0x1ed   :  { %v3124_v2 = vpop.xlane.xlu1 %586  ;;  %v3126_v4 = vpop.xlane.xlu0 %584 }
 0x1f0   :  { %688 = vadd.xlane.f32.xlu1 %v466_v5  ;;  %732 = vadd.xlane.f32.xlu0 %v488_v6  ;;  %v495_v6 = vmul.f32 %v3102_v34, %v276_v60 }
 0x1f1   :  { %v3130_v11 = vpop.xlane.xlu1 %590  ;;  %v3132_v12 = vpop.xlane.xlu0 %588 }
 0x1f4   :  { %720 = vadd.xlane.f32.xlu1 %v482_v13  ;;  %734 = vadd.xlane.f32.xlu0 %v489_v19  ;;  %v264_v13 = vld [vmem:[#allocation11 + $0x378] sm:$0xff] }
 0x1f5   :  { %v3136_v53 = vpop.xlane.xlu1 %594  ;;  %v3138_v9 = vpop.xlane.xlu0 %592 }
 0x1f6   :  { %3816 = vst [vmem:[#allocation24_spill] sm:$0xff] %v3136_v53 }
 0x1f8   :  { %736 = vadd.xlane.f32.xlu0 %v490_v29  ;;  %724 = vadd.xlane.f32.xlu1 %v484_v36  ;;  %v483_v29 = vmul.f32 %v3041_v32, %v264_v13  ;;  %v279_v36 = vld [vmem:[#allocation11 + $0x3f0] sm:$0xff]  ;;  %v2823_v13 = vmov -inf  }
 0x1f9   :  { %v3142_v37 = vpop.xlane.xlu1 %630  ;;  %v3144_v43 = vpop.xlane.xlu0 %628  ;;  %150 = vst.msk [vmem:[#allocation3] sm:$0xff] %vm149_vm0, %v2823_v13 }
 0x1fc   :  { %738 = vadd.xlane.f32.xlu0 %v491_v44  ;;  %740 = vadd.xlane.f32.xlu1 %v492_v46  ;;  %v498_v46 = vmul.f32 %v3102_v34, %v279_v36 }
 0x1fd   :  { %v3148_v30 = vpop.xlane.xlu1 %634  ;;  %v3150_v54 = vpop.xlane.xlu0 %632 }
 0x200   :  { %742 = vadd.xlane.f32.xlu0 %v493_v55  ;;  %744 = vadd.xlane.f32.xlu1 %v494_v62 }
 0x201   :  { %v3154_v1 = vpop.xlane.xlu1 %638  ;;  %v3156_v5 = vpop.xlane.xlu0 %636 }
 0x204   :  { %746 = vadd.xlane.f32.xlu0 %v495_v6  ;;  %748 = vadd.xlane.f32.xlu1 %v496_v8 }
 0x205   :  { %v3160_v19 = vpop.xlane.xlu1 %642  ;;  %v3162_v25 = vpop.xlane.xlu0 %640 }
 0x208   :  { %750 = vadd.xlane.f32.xlu0 %v497_v26  ;;  %722 = vadd.xlane.f32.xlu1 %v483_v29 }
 0x209   :  { %v3166_v35 = vpop.xlane.xlu1 %646  ;;  %v3168_v44 = vpop.xlane.xlu0 %644 }
 0x20c   :  { %752 = vadd.xlane.f32.xlu0 %v498_v46  ;;  %754 = vadd.xlane.f32.xlu1 %v499_v47 }
 0x20d   :  { %v3172_v52 = vpop.xlane.xlu1 %650  ;;  %v3174_v55 = vpop.xlane.xlu0 %648 }
 0x20e   :  { %3817 = vst [vmem:[#allocation25_spill] sm:$0xff] %v3172_v52  ;;  %3818 = vst [vmem:[#allocation26_spill] sm:$0xff] %v3174_v55 }
 0x211   :  { %v3176_v62 = vpop.xlane.xlu1 %654  ;;  %v3178_v32 = vpop.xlane.xlu0 %652 }
 0x212   :  { %3819 = vst [vmem:[#allocation27_spill] sm:$0xff] %v3176_v62  ;;  %3820 = vst [vmem:[#allocation28_spill] sm:$0xff] %v3178_v32 }
 0x215   :  { %v3180_v60 = vpop.xlane.xlu1 %658  ;;  %v3182_v61 = vpop.xlane.xlu0 %656 }
 0x216   :  { %3821 = vst [vmem:[#allocation29_spill] sm:$0xff] %v3180_v60  ;;  %3822 = vst [vmem:[#allocation30_spill] sm:$0xff] %v3182_v61 }
 0x219   :  { %v3184_v6 = vpop.xlane.xlu1 %598  ;;  %v3186_v8 = vpop.xlane.xlu0 %596 }
 0x21d   :  { %v3188_v34 = vpop.xlane.xlu1 %602  ;;  %v3190_v10 = vpop.xlane.xlu0 %600 }
 0x221   :  { %v3195_v26 = vpop.xlane.xlu1 %606  ;;  %v3197_v29 = vpop.xlane.xlu0 %604 }
 0x225   :  { %v3199_v36 = vpop.xlane.xlu1 %610  ;;  %v3201_v16 = vpop.xlane.xlu0 %608 }
 0x229   :  { %v3203_v46 = vpop.xlane.xlu1 %614  ;;  %v3205_v47 = vpop.xlane.xlu0 %612 }
 0x22a   :  { %3823 = vst [vmem:[#allocation31_spill] sm:$0xff] %v3203_v46 }
 0x22d   :  { %v3207_v22 = vpop.xlane.xlu1 %618  ;;  %v3209_v27 = vpop.xlane.xlu0 %616 }
 0x22e   :  { %3824 = vst [vmem:[#allocation32_spill] sm:$0xff] %v3207_v22  ;;  %3825 = vst [vmem:[#allocation33_spill] sm:$0xff] %v3209_v27 }
 0x231   :  { %v3211_v13 = vpop.xlane.xlu1 %622  ;;  %v3213_v3 = vpop.xlane.xlu0 %620 }
 0x232   :  { %3826 = vst [vmem:[#allocation34_spill] sm:$0xff] %v3211_v13  ;;  %3827 = vst [vmem:[#allocation35_spill] sm:$0xff] %v3213_v3 }
 0x235   :  { %v3215_v0 = vpop.xlane.xlu1 %626  ;;  %v3217_v24 = vpop.xlane.xlu0 %624 }
 0x236   :  { %3828 = vst [vmem:[#allocation36_spill] sm:$0xff] %v3215_v0  ;;  %3829 = vst [vmem:[#allocation37_spill] sm:$0xff] %v3217_v24 }
 0x239   :  { %v3219_v60 = vpop.xlane.xlu1 %662  ;;  %v3221_v61 = vpop.xlane.xlu0 %660 }
 0x23d   :  { %v3223_v32 = vpop.xlane.xlu1 %666  ;;  %v3225_v62 = vpop.xlane.xlu0 %664 }
 0x241   :  { %v3227_v52 = vpop.xlane.xlu1 %670  ;;  %v3229_v22 = vpop.xlane.xlu0 %668 }
 0x242   :  { %3830 = vst [vmem:[#allocation38_spill] sm:$0xff] %v3227_v52  ;;  %3831 = vst [vmem:[#allocation39_spill] sm:$0xff] %v3229_v22 }
 0x245   :  { %v3231_v27 = vpop.xlane.xlu1 %674  ;;  %v3233_v13 = vpop.xlane.xlu0 %672 }
 0x246   :  { %3832 = vst [vmem:[#allocation40_spill] sm:$0xff] %v3231_v27 }
 0x249   :  { %v3235_v3 = vpop.xlane.xlu1 %678  ;;  %v3237_v0 = vpop.xlane.xlu0 %676 }
 0x24a   :  { %3833 = vst [vmem:[#allocation41_spill] sm:$0xff] %v3235_v3  ;;  %3834 = vst [vmem:[#allocation42_spill] sm:$0xff] %v3237_v0  ;;  %v1085_v3 = vrot.slane %v3085_v14, %v2926_v15  ;;  %v1081_v0 = vrot.slane %v3087_v18, %v2921_v20  ;;  %v1100_v14 = vrot.slane %v3108_v42, %v2946_v39 }
 0x24b   :  { %v1243_v42 = vrot.slane %v3142_v37, %v2926_v15  ;;  %v1120_v37 = vrot.slane %v3120_v58, %v2976_v7  ;;  %v1125_v58 = vrot.slane %v3118_v57, %v2970_v63 }
 0x24d   :  { %v3239_v24 = vpop.xlane.xlu1 %694  ;;  %v3241_v53 = vpop.xlane.xlu0 %692 }
 0x24e   :  { %3835 = vst [vmem:[#allocation43_spill] sm:$0xff] %v3241_v53  ;;  %v1090_v53 = vrot.slane %v3099_v33, %v2931_v21  ;;  %v1105_v33 = vrot.slane %v3106_v41, %v2943_v38  ;;  %v1248_v41 = vrot.slane %v3150_v54, %v2931_v21 }
 0x251   :  { %v3243_v56 = vpop.xlane.xlu1 %698  ;;  %v3245_v46 = vpop.xlane.xlu0 %696 }
 0x252   :  { %3836 = vst [vmem:[#allocation44_spill] sm:$0xff] %v3243_v56  ;;  %3837 = vst [vmem:[#allocation45_spill] sm:$0xff] %v3245_v46 }
 0x255   :  { %v3247_v55 = vpop.xlane.xlu1 %700  ;;  %v3249_v52 = vpop.xlane.xlu0 %710 }
 0x256   :  { %3838 = vst [vmem:[#allocation46_spill] sm:$0xff] %v3247_v55  ;;  %3839 = vst [vmem:[#allocation47_spill] sm:$0xff] %v3249_v52  ;;  %v1086_v55 = vsel %vm899_vm1, %v1085_v3, %v1081_v0  ;;  %v1095_v52 = vrot.slane %v3097_v31, %v2934_v23  ;;  %v1110_v3 = vrot.slane %v3114_v51, %v2958_v49 }
 0x257   :  { %v1164_v51 = vrot.slane %v3184_v6, %v2926_v15  ;;  %v1253_v6 = vrot.slane %v3148_v30, %v2934_v23  ;;  %v1130_v30 = vrot.slane %v3126_v4, %v2994_v28  ;;  %v1135_v4 = vrot.slane %v3124_v2, %v2988_v17 }
 0x259   :  { %v3251_v22 = vpop.xlane.xlu1 %702  ;;  %v3253_v27 = vpop.xlane.xlu0 %682 }
 0x25a   :  { %3840 = vst [vmem:[#allocation48_spill] sm:$0xff] %v3251_v22  ;;  %3841 = vst [vmem:[#allocation49_spill] sm:$0xff] %v3253_v27  ;;  %v1091_v27 = vsel %vm906_vm2, %v1090_v53, %v1086_v55  ;;  %v1239_v55 = vrot.slane %v3144_v43, %v2921_v20  ;;  %v1169_v43 = vrot.slane %v3190_v10, %v2931_v21 }
 0x25d   :  { %v3261_v56 = vpop.xlane.xlu1 %704  ;;  %v3263_v46 = vpop.xlane.xlu0 %714 }
 0x25e   :  { %3842 = vst [vmem:[#allocation50_spill] sm:$0xff] %v3261_v56  ;;  %3843 = vst [vmem:[#allocation51_spill] sm:$0xff] %v3263_v46  ;;  %v1096_v56 = vsel %vm913_vm3, %v1095_v52, %v1091_v27  ;;  %v1115_v27 = vrot.slane %v3112_v50, %v2955_v48  ;;  %v1160_v52 = vrot.slane %v3186_v8, %v2921_v20 }
 0x25f   :  { %v1101_v46 = vsel %vm920_vm4, %v1100_v14, %v1096_v56  ;;  %v1244_v50 = vsel %vm899_vm1, %v1243_v42, %v1239_v55  ;;  %v1258_v8 = vrot.slane %v3156_v5, %v2946_v39  ;;  %v1179_v5 = vrot.slane %v3197_v29, %v2946_v39 }
 0x260   :  { %v1106_v56 = vsel %vm927_vm5, %v1105_v33, %v1101_v46  ;;  %v1249_v46 = vsel %vm906_vm2, %v1248_v41, %v1244_v50  ;;  %v1165_v10 = vsel %vm899_vm1, %v1164_v51, %v1160_v52  ;;  %v1268_v51 = vrot.slane %v3162_v25, %v2958_v49 }
 0x261   :  { %v3271_v22 = vpop.xlane.xlu1 %706  ;;  %v3273_v18 = vpop.xlane.xlu0 %686  ;;  %v1111_v0 = vsel %vm934_vm6, %v1110_v3, %v1106_v56  ;;  %v1174_v3 = vrot.slane %v3188_v34, %v2934_v23  ;;  %v1170_v55 = vsel %vm906_vm2, %v1169_v43, %v1165_v10  ;;  %v1254_v56 = vsel %vm913_vm3, %v1253_v6, %v1249_v46 }
 0x262   :  { %v1116_v33 = vsel %vm941_vm7, %v1115_v27, %v1111_v0  ;;  %v1263_v27 = vrot.slane %v3154_v1, %v2943_v38  ;;  %v1259_v34 = vsel %vm920_vm4, %v1258_v8, %v1254_v56  ;;  %v1184_v29 = vrot.slane %v3195_v26, %v2943_v38 }
 0x263   :  { %v1121_v42 = vsel %vm948_vm8, %v1120_v37, %v1116_v33  ;;  %v1175_v0 = vsel %vm913_vm3, %v1174_v3, %v1170_v55  ;;  %v1140_v1 = vrot.slane %v3132_v12, %v3008_v45  ;;  %v1189_v25 = vrot.slane %v3201_v16, %v2958_v49 }
 0x264   :  { %v1126_v52 = vsel %vm955_vm9, %v1125_v58, %v1121_v42  ;;  %v1180_v43 = vsel %vm920_vm4, %v1179_v5, %v1175_v0  ;;  %v1273_v6 = vrot.slane %v3160_v19, %v2955_v48  ;;  %v1264_v26 = vsel %vm927_vm5, %v1263_v27, %v1259_v34  ;;  %v3844_v27 = vld [vmem:[#allocation26_spill] sm:$0xff]  ;;  %v3845_v34 = vld [vmem:[#allocation39_spill] sm:$0xff]  ;;  %v3848_v0 = vld [vmem:[#allocation24_spill] sm:$0xff] }
 0x265   :  { %v3281_v31 = vpop.xlane.xlu1 %708  ;;  %v3283_v53 = vpop.xlane.xlu0 %718  ;;  %v1131_v37 = vsel %vm962_vm10, %v1130_v30, %v1126_v52  ;;  %v1322_v46 = vrot.slane %v3219_v60, %v2926_v15  ;;  %v1318_v12 = vrot.slane %v3221_v61, %v2921_v20  ;;  %v1269_v8 = vsel %vm934_vm6, %v1268_v51, %v1264_v26 }
 0x266   :  { %v1278_v16 = vrot.slane %v3168_v44, %v2976_v7  ;;  %v1327_v58 = vrot.slane %v3225_v62, %v2931_v21  ;;  %v1145_v33 = vrot.slane %v3130_v11, %v3002_v40  ;;  %v1136_v19 = vsel %vm969_vm11, %v1135_v4, %v1131_v37  ;;  %v3846_v4 = vld [vmem:[#allocation31_spill] sm:$0xff] }
 0x267   :  { %v1194_v10 = vrot.slane %v3199_v36, %v2955_v48  ;;  %v1185_v60 = vsel %vm927_vm5, %v1184_v29, %v1180_v43  ;;  %v1141_v61 = vsel %vm976_vm12, %v1140_v1, %v1136_v19  ;;  %v1150_v3 = vrot.slane %v3138_v9, %v3021_v59  ;;  %v3847_v29 = vld [vmem:[#allocation22_spill] sm:$0xff]  ;;  %v3849_v43 = vld [vmem:[#allocation33_spill] sm:$0xff] }
 0x268   :  { %v1190_v44 = vsel %vm934_vm6, %v1189_v25, %v1185_v60  ;;  %v1199_v62 = vrot.slane %v3205_v47, %v2976_v7  ;;  %v1283_v30 = vrot.slane %v3166_v35, %v2970_v63  ;;  %v1274_v36 = vsel %vm941_vm7, %v1273_v6, %v1269_v8  ;;  %v3850_v8 = vld [vmem:[#allocation38_spill] sm:$0xff]  ;;  %v3851_v19 = vld [vmem:[#allocation25_spill] sm:$0xff] }
 0x269   :  { %v3303_v54 = vpop.xlane.xlu1 %680  ;;  %v3305_v14 = vpop.xlane.xlu0 %690  ;;  %v1323_v55 = vsel %vm899_vm1, %v1322_v46, %v1318_v12  ;;  %v1332_v5 = vrot.slane %v3223_v32, %v2934_v23  ;;  %v1279_v9 = vsel %vm948_vm8, %v1278_v16, %v1274_v36  ;;  %v1288_v56 = vrot.slane %v3844_v27, %v2994_v28  ;;  %v3853_v36 = vld [vmem:[#allocation43_spill] sm:$0xff] }
 0x26a   :  { %v1328_v47 = vsel %vm906_vm2, %v1327_v58, %v1323_v55  ;;  %v1337_v51 = vrot.slane %v3845_v34, %v2946_v39  ;;  %v1204_v35 = vrot.slane %v3846_v4, %v2970_v63  ;;  %v1195_v52 = vsel %vm941_vm7, %v1194_v10, %v1190_v44  ;;  %v3852_v44 = vld [vmem:[#allocation32_spill] sm:$0xff] }
 0x26b   :  { %v1155_v37 = vrot.slane %v3848_v0, %v3847_v29  ;;  %v1146_v32 = vsel %vm983_vm13, %v1145_v33, %v1141_v61  ;;  %v1200_v1 = vsel %vm948_vm8, %v1199_v62, %v1195_v52  ;;  %v1209_v25 = vrot.slane %v3849_v43, %v2994_v28  ;;  %v3856_v4 = vld [vmem:[#allocation40_spill] sm:$0xff]  ;;  %v3857_v52 = vld [vmem:[#allocation27_spill] sm:$0xff]  ;;  %v3858_v43 = vld [vmem:[#allocation42_spill] sm:$0xff] }
 0x26c   :  { %v1151_v46 = vsel %vm990_vm14, %v1150_v3, %v1146_v32  ;;  %v1284_v12 = vsel %vm955_vm9, %v1283_v30, %v1279_v9  ;;  %v1342_v16 = vrot.slane %v3850_v8, %v2943_v38  ;;  %v1333_v58 = vsel %vm913_vm3, %v1332_v5, %v1328_v47  ;;  %v3854_v9 = vld [vmem:[#allocation35_spill] sm:$0xff] }
 0x26d   :  { %v3325_v41 = vpop.xlane.xlu1 %712  ;;  %v3327_v57 = vpop.xlane.xlu0 %726  ;;  %v1293_v33 = vrot.slane %v3851_v19, %v2988_v17  ;;  %v1289_v10 = vsel %vm962_vm10, %v1288_v56, %v1284_v12  ;;  %v1338_v60 = vsel %vm920_vm4, %v1337_v51, %v1333_v58  ;;  %v1347_v61 = vrot.slane %v3233_v13, %v2958_v49  ;;  %v3855_v56 = vld [vmem:[#allocation45_spill] sm:$0xff]  ;;  %v3859_v12 = vld [vmem:[#allocation28_spill] sm:$0xff]  ;;  %v3861_v19 = vld [vmem:[#allocation34_spill] sm:$0xff] }
 0x26e   :  { %v1214_v3 = vrot.slane %v3852_v44, %v2988_v17  ;;  %v1205_v62 = vsel %vm955_vm9, %v1204_v35, %v1200_v1  ;;  %v1401_v30 = vrot.slane %v3239_v24, %v2926_v15  ;;  %v1397_v55 = vrot.slane %v3853_v36, %v2921_v20  ;;  %v3860_v58 = vld [vmem:[#allocation44_spill] sm:$0xff] }
 0x26f   :  { %v1210_v5 = vsel %vm962_vm10, %v1209_v25, %v1205_v62  ;;  %v1219_v27 = vrot.slane %v3854_v9, %v3008_v45  ;;  %v1406_v47 = vrot.slane %v3855_v56, %v2931_v21  ;;  %v3428_v51 = vsel %vm997_vm15, %v1155_v37, %v1151_v46  ;;  %v3864_v56 = vld [vmem:[#allocation41_spill] sm:$0xff] }
 0x270   :  { %v1352_v24 = vrot.slane %v3856_v4, %v2955_v48  ;;  %v1343_v35 = vsel %vm927_vm5, %v1342_v16, %v1338_v60  ;;  %v1303_v0 = vrot.slane %v3857_v52, %v3002_v40  ;;  %v1294_v32 = vsel %vm969_vm11, %v1293_v33, %v1289_v10  ;;  %v3865_v4 = vld [vmem:[#allocation50_spill] sm:$0xff] }
 0x271   :  { %v3347_v50 = vpop.xlane.xlu1 %684  ;;  %v3349_v2 = vpop.xlane.xlu0 %728  ;;  %v1348_v1 = vsel %vm934_vm6, %v1347_v61, %v1343_v35  ;;  %v1357_v25 = vrot.slane %v3858_v43, %v2976_v7  ;;  %v1298_v8 = vrot.slane %v3859_v12, %v3008_v45  ;;  %v1215_v37 = vsel %vm969_vm11, %v1214_v3, %v1210_v5  ;;  %v3862_v61 = vld [vmem:[#allocation46_spill] sm:$0xff]  ;;  %v3863_v3 = vld [vmem:[#allocation48_spill] sm:$0xff] }
 0x272   :  { %v1402_v46 = vsel %vm899_vm1, %v1401_v30, %v1397_v55  ;;  %v1411_v16 = vrot.slane %v3860_v58, %v2934_v23  ;;  %v1224_v60 = vrot.slane %v3861_v19, %v3002_v40  ;;  %v1220_v33 = vsel %vm976_vm12, %v1219_v27, %v1215_v37  ;;  %v3866_v58 = vld [vmem:[#allocation37_spill] sm:$0xff] }
 0x273   :  { %v1407_v10 = vsel %vm906_vm2, %v1406_v47, %v1402_v46  ;;  %v1416_v44 = vrot.slane %v3862_v61, %v2946_v39  ;;  %v1353_v9 = vsel %vm941_vm7, %v1352_v24, %v1348_v1  ;;  %v1421_v30 = vrot.slane %v3863_v3, %v2943_v38 }
 0x274   :  { %v1480_v55 = vrot.slane %v3327_v57, %v2926_v15  ;;  %v1362_v27 = vrot.slane %v3864_v56, %v2970_v63  ;;  %v1358_v47 = vsel %vm948_vm8, %v1357_v25, %v1353_v9  ;;  %v1426_v35 = vrot.slane %v3865_v4, %v2958_v49  ;;  %v3868_v56 = vld [vmem:[#allocation30_spill] sm:$0xff] }
 0x275   :  { %v3375_v42 = vpop.xlane.xlu1 %716  ;;  %v3377_v11 = vpop.xlane.xlu0 %730  ;;  %v1485_v43 = vrot.slane %v3349_v2, %v2931_v21  ;;  %v1412_v24 = vsel %vm913_vm3, %v1411_v16, %v1407_v10  ;;  %v1431_v1 = vrot.slane %v3271_v22, %v2955_v48  ;;  %v1436_v25 = vrot.slane %v3281_v31, %v2976_v7 }
 0x276   :  { %v1490_v15 = vrot.slane %v3377_v11, %v2934_v23  ;;  %v1417_v57 = vsel %vm920_vm4, %v1416_v44, %v1412_v24  ;;  %v1367_v22 = vrot.slane %v3303_v54, %v2994_v28  ;;  %v1229_v16 = vrot.slane %v3866_v58, %v3021_v59 }
 0x277   :  { %v1422_v46 = vsel %vm927_vm5, %v1421_v30, %v1417_v57  ;;  %v1363_v10 = vsel %vm955_vm9, %v1362_v27, %v1358_v47  ;;  %v1377_v30 = vrot.slane %v3347_v50, %v3008_v45  ;;  %v1308_v27 = vrot.slane %v3868_v56, %v3021_v59  ;;  %v3871_v57 = vld [vmem:[#allocation51_spill] sm:$0xff] }
 0x278   :  { %v1427_v31 = vsel %vm934_vm6, %v1426_v35, %v1422_v46  ;;  %v1368_v3 = vsel %vm962_vm10, %v1367_v22, %v1363_v10  ;;  %v3870_v35 = vld [vmem:[#allocation36_spill] sm:$0xff]  ;;  %v1225_v24 = vsel %vm983_vm13, %v1224_v60, %v1220_v33  ;;  %v3872_v46 = vld [vmem:[#allocation29_spill] sm:$0xff]  ;;  %v1461_v52 = vrot.slane %v3283_v53, %v3002_v40 }
 0x279   :  { %v3400_v6 = vpop.xlane.xlu1 %688  ;;  %v733_v26 = vpop.xlane.xlu0 %732  ;;  %v1432_v19 = vsel %vm941_vm7, %v1431_v1, %v1427_v31  ;;  %v1313_v22 = vrot.slane %v3872_v46, %v3847_v29  ;;  %v1392_v10 = vrot.slane %v3305_v14, %v3847_v29 }
 0x27a   :  { %v1495_v12 = vrot.slane %v733_v26, %v2946_v39  ;;  %v1437_v44 = vsel %vm948_vm8, %v1436_v25, %v1432_v19  ;;  %v1451_v25 = vrot.slane %v3871_v57, %v2988_v17  ;;  %v1387_v33 = vrot.slane %v3400_v6, %v3021_v59  ;;  %v3873_v19 = vld [vmem:[#allocation23_spill] sm:$0xff] }
 0x27d   :  { %v3425_v13 = vpop.xlane.xlu1 %720  ;;  %v735_v34 = vpop.xlane.xlu0 %734 }
 0x27e   :  { %v1500_v23 = vrot.slane %v735_v34, %v2943_v38  ;;  %v3867_v34 = vld [vmem:[#allocation47_spill] sm:$0xff] }
 0x27f   :  { %v1441_v61 = vrot.slane %v3867_v34, %v2970_v63 }
 0x281   :  { %v737_v62 = vpop.xlane.xlu0 %736  ;;  %v725_v36 = vpop.xlane.xlu1 %724  ;;  %v1442_v50 = vsel %vm955_vm9, %v1441_v61, %v1437_v44 }
 0x282   :  { %v1476_v5 = vrot.slane %v725_v36, %v2921_v20  ;;  %v1505_v39 = vrot.slane %v737_v62, %v2958_v49  ;;  %v1446_v49 = vrot.slane %v3325_v41, %v2994_v28  ;;  %v3869_v41 = vld [vmem:[#allocation49_spill] sm:$0xff] }
 0x283   :  { %v1372_v47 = vrot.slane %v3869_v41, %v2988_v17  ;;  %v1569_v41 = vld [vmem:[#allocation3] sm:$0xff] }
 0x284   :  { %v1481_v20 = vsel %vm899_vm1, %v1480_v55, %v1476_v5  ;;  %vm1554_vm1 = vcmask 1042434   ;;  %v1299_v5 = vsel %vm976_vm12, %v1298_v8, %v1294_v32  ;;  %v1447_v32 = vsel %vm962_vm10, %v1446_v49, %v1442_v50 }
 0x285   :  { %v1486_v37 = vsel %vm906_vm2, %v1485_v43, %v1481_v20  ;;  %v739_v21 = vpop.xlane.xlu0 %738  ;;  %v741_v2 = vpop.xlane.xlu1 %740  ;;  %vm1556_vm2 = vcmask 1043459   ;;  %v1234_v43 = vrot.slane %v3870_v35, %v3847_v29  ;;  %v1373_v8 = vsel %vm969_vm11, %v1372_v47, %v1368_v3 }
 0x286   :  { %v1491_v11 = vsel %vm913_vm3, %v1490_v15, %v1486_v37  ;;  %v1510_v38 = vrot.slane %v739_v21, %v2955_v48  ;;  %v1515_v55 = vrot.slane %v741_v2, %v2976_v7  ;;  %v1230_v7 = vsel %vm990_vm14, %v1229_v16, %v1225_v24 }
 0x287   :  { %v1496_v26 = vsel %vm920_vm4, %v1495_v12, %v1491_v11  ;;  %v1456_v15 = vrot.slane %v3375_v42, %v3008_v45  ;;  %v1378_v60 = vsel %vm976_vm12, %v1377_v30, %v1373_v8  ;;  %v1304_v37 = vsel %vm983_vm13, %v1303_v0, %v1299_v5 }
 0x288   :  { %v1501_v54 = vsel %vm927_vm5, %v1500_v23, %v1496_v26  ;;  %v1382_v42 = vrot.slane %v3273_v18, %v3002_v40  ;;  %v1309_v23 = vsel %vm990_vm14, %v1308_v27, %v1304_v37  ;;  %v1235_v6 = vsel %vm997_vm15, %v1234_v43, %v1230_v7 }
 0x289   :  { %v1506_v62 = vsel %vm934_vm6, %v1505_v39, %v1501_v54  ;;  %v743_v36 = vpop.xlane.xlu0 %742  ;;  %v745_v9 = vpop.xlane.xlu1 %744  ;;  %v1466_v11 = vrot.slane %v3425_v13, %v3021_v59  ;;  %v1555_v53 = vsel %vm1554_vm1, %v3428_v51, %v3873_v19  ;;  %vm1558_vm3 = vcmask 1044484  }
 0x28a   :  { %v1511_v48 = vsel %vm941_vm7, %v1510_v38, %v1506_v62  ;;  %v1520_v4 = vrot.slane %v743_v36, %v2970_v63  ;;  %v1525_v12 = vrot.slane %v745_v9, %v2994_v28  ;;  %v1452_v28 = vsel %vm969_vm11, %v1451_v25, %v1447_v32 }
 0x28b   :  { %v1516_v1 = vsel %vm948_vm8, %v1515_v55, %v1511_v48  ;;  %v1457_v0 = vsel %vm976_vm12, %v1456_v15, %v1452_v28  ;;  %v1383_v18 = vsel %vm983_vm13, %v1382_v42, %v1378_v60  ;;  %v1314_v38 = vsel %vm997_vm15, %v1313_v22, %v1309_v23  ;;  %v3874_v48 = vld [vmem:[#allocation21_spill] sm:$0xff]  ;;  %v3875_v15 = vld [vmem:[#allocation20_spill] sm:$0xff] }
 0x28c   :  { %v1521_v21 = vsel %vm955_vm9, %v1520_v4, %v1516_v1  ;;  %v1388_v16 = vsel %vm990_vm14, %v1387_v33, %v1383_v18  ;;  %v1557_v34 = vsel %vm1556_vm2, %v1235_v6, %v1555_v53  ;;  %v1462_v61 = vsel %vm983_vm13, %v1461_v52, %v1457_v0  ;;  %v1584_v0 = vld [vmem:[#allocation4] sm:$0xff] }
 0x28d   :  { %v747_v20 = vpop.xlane.xlu0 %746  ;;  %v749_v63 = vpop.xlane.xlu1 %748  ;;  %v1526_v31 = vsel %vm962_vm10, %v1525_v12, %v1521_v21  ;;  %v1467_v44 = vsel %vm990_vm14, %v1466_v11, %v1462_v61  ;;  %vm1560_vm4 = vcmask 1045509   ;;  %vm1562_vm5 = vcmask 1046534  }
 0x28e   :  { %v1530_v2 = vrot.slane %v747_v20, %v2988_v17  ;;  %v1535_v39 = vrot.slane %v749_v63, %v3008_v45  ;;  %v1393_v45 = vsel %vm997_vm15, %v1392_v10, %v1388_v16  ;;  %v1559_v3 = vsel %vm1558_vm3, %v1314_v38, %v1557_v34  ;;  %v3876_v63 = vld [vmem:[#allocation19_spill] sm:$0xff] }
 0x28f   :  { %vm1564_vm6 = vcmask 1047559   ;;  %vm761_vm7 = vcmp.lt.s32.totalorder %v3874_v48, 8  ;;  %v1561_v55 = vsel %vm1560_vm4, %v1393_v45, %v1559_v3  ;;  %v1667_v57 = vsub.s32 1, %v3876_v63  ;;  %v2580_v3 = vld [vmem:[#allocation11 + $0x88] sm:$0xff] }
 0x290   :  { %v1531_v54 = vsel %vm969_vm11, %v1530_v2, %v1526_v31  ;;  %v1734_v60 = vsub.s32 2, %v3876_v63  ;;  %v1801_v12 = vsub.s32 3, %v3876_v63  ;;  %v1868_v23 = vsub.s32 4, %v3876_v63 }
 0x291   :  { %v751_v17 = vpop.xlane.xlu0 %750  ;;  %v723_v58 = vpop.xlane.xlu1 %722  ;;  %v1536_v14 = vsel %vm976_vm12, %v1535_v39, %v1531_v54  ;;  %v1935_v54 = vsub.s32 5, %v3876_v63  ;;  %v2002_v61 = vsub.s32 6, %v3876_v63  ;;  %vm3877_vm8 = vcmask 1041409  }
 0x292   :  { %v1471_v26 = vrot.slane %v723_v58, %v3847_v29  ;;  %v1540_v13 = vrot.slane %v751_v17, %v3002_v40 }
 0x294   :  { %v1472_v62 = vsel %vm997_vm15, %v1471_v26, %v1467_v44  ;;  %v1541_v9 = vsel %vm983_vm13, %v1540_v13, %v1536_v14 }
 0x295   :  { %v753_v49 = vpop.xlane.xlu0 %752  ;;  %v755_v51 = vpop.xlane.xlu1 %754  ;;  %v1563_v56 = vsel %vm1562_vm5, %v1472_v62, %v1561_v55  ;;  %v2069_v62 = vsub.s32 7, %v3876_v63  ;;  %v2587_v63 = vld [vmem:[#allocation11 + $0xa0] sm:$0xff] }
 0x296   :  { %v1545_v40 = vrot.slane %v753_v49, %v3021_v59  ;;  %v1550_v36 = vrot.slane %v755_v51, %v3847_v29  ;;  %v2824_v29 = vmov 0  }
 0x297   :  { %2569 = vset.pattern.permute.xlu1 %v2824_v29  ;;  %2570 = vset.pattern.permute.xlu0 %v2824_v29  ;;  %v2582_v29 = vld [vmem:[#allocation11 + $0x90] sm:$0xff] }
 0x298   :  { %v1546_v30 = vsel %vm990_vm14, %v1545_v40, %v1541_v9  ;;  %v2579_v40 = vld [vmem:[#allocation11 + $0x80] sm:$0xff] }
 0x299   :  { %v1551_v5 = vsel %vm997_vm15, %v1550_v36, %v1546_v30 }
 0x29a   :  { %v1565_v27 = vsel %vm1564_vm6, %v1551_v5, %v1563_v56  ;;  %v2581_v5 = vld [vmem:[#allocation11 + $0x8] sm:$0xff] }
 0x29b   :  { %v3569_v59 = vsel %vm761_vm7, %v1565_v27, -inf }
 0x29c   :  { %1570 = vmax.xlane.f32.xlu0 %v3569_v59 }
 0x325   :  { %v1571_v47 = vpop.xlane.xlu0 %1570 }
 0x326   :  { %v1572_v4 = vmax.f32 %v1569_v41, %v1571_v47 }
 0x328   :  { %v1573_v35 = vsub.f32 %v1569_v41, %v1572_v4  ;;  %2448 = vst.msk [vmem:[#allocation3] sm:$0xff] %vm149_vm0, %v1572_v4  ;;  %1578 = vperm.xlu1 %2569, %v1572_v4   ;;  %v2583_v4 = vld [vmem:[#allocation11] sm:$0xff] }
 0x32a   :  { %v1574_v43 = vmul.f32 1.442695, %v1573_v35 }
 0x32c   :  { %2571 = vpow2.f32 %v1574_v43  ;;  %v2584_v43 = vld [vmem:[#allocation11 + $0x10] sm:$0xff] }
 0x32f   :  { %v2464_v24 = vld [vmem:[#allocation3] sm:$0xff] }
 0x330   :  { %2467 = vperm.xlu1 %2569, %v2464_v24  }
 0x339   :  { %v3573_v50 = vpop.eup %2571 }
 0x33a   :  { %1594 = vperm.xlu0 %2570, %v3573_v50   ;;  %v1585_v11 = vmul.f32 %v3573_v50, %v1584_v0  ;;  %v2585_v50 = vld [vmem:[#allocation11 + $0x98] sm:$0xff] }
 0x3a3   :  { %v1579_v1 = vpop.permute.xlu1 %1578 }
 0x3a4   :  { %v1581_v7 = vsub.f32 %v3569_v59, %v1579_v1 }
 0x3a6   :  { %v1582_v32 = vmul.f32 1.442695, %v1581_v7 }
 0x3a8   :  { %2573 = vpow2.f32 %v1582_v32 }
 0x3ab   :  { %v3588_v42 = vpop.permute.xlu1 %2467 }
 0x3b5   :  { %v3577_v8 = vpop.eup %2573  ;;  %v3604_v52 = vpop.permute.xlu0 %1594 }
 0x3b6   :  { %1586 = vadd.xlane.f32.xlu0 %v3577_v8  ;;  %v1601_v20 = vrot.slane %v3577_v8, %v3875_v15  ;;  %v1668_v25 = vrot.slane %v3577_v8, %v1667_v57  ;;  %v1735_v33 = vrot.slane %v3577_v8, %v1734_v60  ;;  %v1802_v37 = vrot.slane %v3577_v8, %v1801_v12  ;;  %v2586_v15 = vld [vmem:[#allocation11 + $0x18] sm:$0xff]  ;;  %v2588_v12 = vld [vmem:[#allocation11 + $0x20] sm:$0xff] }
 0x3b7   :  { %v3602_v28 = vrot.slane %v3577_v8, %v1868_v23  ;;  %v3639_v34 = vrot.slane %v3577_v8, %v1935_v54  ;;  %v3647_v49 = vrot.slane %v3577_v8, %v2002_v61  ;;  %v3655_v55 = vrot.slane %v3577_v8, %v2069_v62  ;;  %v2593_v62 = vld [vmem:[#allocation11 + $0xb8] sm:$0xff] }
 0x3b8   :  { %1603 = vbcast.lane.b32.xlu1 %v1601_v20, 256 }
 0x3bc   :  { %1607 = vbcast.lane.b32.xlu1 %v1601_v20, 264 }
 0x3c0   :  { %1611 = vbcast.lane.b32.xlu1 %v1601_v20, 272 }
 0x3c4   :  { %1615 = vbcast.lane.b32.xlu1 %v1601_v20, 280 }
 0x3c8   :  { %1619 = vbcast.lane.b32.xlu1 %v1601_v20, 288 }
 0x3cc   :  { %1623 = vbcast.lane.b32.xlu1 %v1601_v20, 296  ;;  %1639 = vbcast.lane.b32.xlu0 %v1601_v20, 328 }
 0x3d0   :  { %1627 = vbcast.lane.b32.xlu1 %v1601_v20, 304  ;;  %1647 = vbcast.lane.b32.xlu0 %v1601_v20, 344 }
 0x3d4   :  { %1631 = vbcast.lane.b32.xlu1 %v1601_v20, 312  ;;  %1655 = vbcast.lane.b32.xlu0 %v1601_v20, 360 }
 0x3d8   :  { %1635 = vbcast.lane.b32.xlu1 %v1601_v20, 320  ;;  %1663 = vbcast.lane.b32.xlu0 %v1601_v20, 376 }
 0x3dc   :  { %1643 = vbcast.lane.b32.xlu1 %v1601_v20, 336  ;;  %1674 = vbcast.lane.b32.xlu0 %v1668_v25, 264 }
 0x3e0   :  { %1651 = vbcast.lane.b32.xlu1 %v1601_v20, 352  ;;  %1682 = vbcast.lane.b32.xlu0 %v1668_v25, 280 }
 0x3e4   :  { %1659 = vbcast.lane.b32.xlu1 %v1601_v20, 368  ;;  %1690 = vbcast.lane.b32.xlu0 %v1668_v25, 296 }
 0x3e8   :  { %1670 = vbcast.lane.b32.xlu1 %v1668_v25, 256  ;;  %1698 = vbcast.lane.b32.xlu0 %v1668_v25, 312 }
 0x3ec   :  { %1678 = vbcast.lane.b32.xlu1 %v1668_v25, 272  ;;  %1706 = vbcast.lane.b32.xlu0 %v1668_v25, 328 }
 0x3f0   :  { %1686 = vbcast.lane.b32.xlu1 %v1668_v25, 288  ;;  %1714 = vbcast.lane.b32.xlu0 %v1668_v25, 344 }
 0x3f4   :  { %1694 = vbcast.lane.b32.xlu1 %v1668_v25, 304  ;;  %1722 = vbcast.lane.b32.xlu0 %v1668_v25, 360 }
 0x3f8   :  { %1702 = vbcast.lane.b32.xlu1 %v1668_v25, 320  ;;  %1730 = vbcast.lane.b32.xlu0 %v1668_v25, 376 }
 0x3fc   :  { %1710 = vbcast.lane.b32.xlu1 %v1668_v25, 336  ;;  %1741 = vbcast.lane.b32.xlu0 %v1735_v33, 264 }
 0x400   :  { %1718 = vbcast.lane.b32.xlu1 %v1668_v25, 352  ;;  %1749 = vbcast.lane.b32.xlu0 %v1735_v33, 280 }
 0x404   :  { %1726 = vbcast.lane.b32.xlu1 %v1668_v25, 368  ;;  %1757 = vbcast.lane.b32.xlu0 %v1735_v33, 296 }
 0x408   :  { %1737 = vbcast.lane.b32.xlu1 %v1735_v33, 256  ;;  %1765 = vbcast.lane.b32.xlu0 %v1735_v33, 312 }
 0x40c   :  { %1745 = vbcast.lane.b32.xlu1 %v1735_v33, 272  ;;  %1773 = vbcast.lane.b32.xlu0 %v1735_v33, 328 }
 0x410   :  { %1753 = vbcast.lane.b32.xlu1 %v1735_v33, 288  ;;  %1781 = vbcast.lane.b32.xlu0 %v1735_v33, 344 }
 0x414   :  { %1761 = vbcast.lane.b32.xlu1 %v1735_v33, 304  ;;  %1789 = vbcast.lane.b32.xlu0 %v1735_v33, 360 }
 0x418   :  { %1769 = vbcast.lane.b32.xlu1 %v1735_v33, 320  ;;  %1797 = vbcast.lane.b32.xlu0 %v1735_v33, 376 }
 0x41c   :  { %1777 = vbcast.lane.b32.xlu1 %v1735_v33, 336  ;;  %1808 = vbcast.lane.b32.xlu0 %v1802_v37, 264 }
 0x420   :  { %1785 = vbcast.lane.b32.xlu1 %v1735_v33, 352  ;;  %1816 = vbcast.lane.b32.xlu0 %v1802_v37, 280 }
 0x424   :  { %1793 = vbcast.lane.b32.xlu1 %v1735_v33, 368  ;;  %1824 = vbcast.lane.b32.xlu0 %v1802_v37, 296 }
 0x428   :  { %1804 = vbcast.lane.b32.xlu1 %v1802_v37, 256  ;;  %1832 = vbcast.lane.b32.xlu0 %v1802_v37, 312 }
 0x42a   :  { %v3590_v21 = vpop.permute.xlu1 %1603 }
 0x42b   :  { %v2134_v35 = vmul.f32 %v2583_v4, %v3590_v21  ;;  %v2589_v21 = vld [vmem:[#allocation11 + $0xa8] sm:$0xff] }
 0x42c   :  { %1812 = vbcast.lane.b32.xlu1 %v1802_v37, 272  ;;  %1840 = vbcast.lane.b32.xlu0 %v1802_v37, 328 }
 0x42e   :  { %v3592_v2 = vpop.permute.xlu1 %1607 }
 0x42f   :  { %v2135_v56 = vmul.f32 %v2581_v5, %v3592_v2 }
 0x430   :  { %1820 = vbcast.lane.b32.xlu1 %v1802_v37, 288  ;;  %1848 = vbcast.lane.b32.xlu0 %v1802_v37, 344 }
 0x431   :  { %v2262_v8 = vadd.f32 %v2135_v56, %v2134_v35 }
 0x432   :  { %v3594_v46 = vpop.permute.xlu1 %1611 }
 0x433   :  { %v2136_v24 = vmul.f32 %v2584_v43, %v3594_v46  ;;  %v2597_v43 = vld [vmem:[#allocation11 + $0xc8] sm:$0xff] }
 0x434   :  { %1828 = vbcast.lane.b32.xlu1 %v1802_v37, 304  ;;  %1856 = vbcast.lane.b32.xlu0 %v1802_v37, 360 }
 0x435   :  { %v2263_v33 = vadd.f32 %v2262_v8, %v2136_v24  ;;  %v2599_v8 = vld [vmem:[#allocation11 + $0xd0] sm:$0xff] }
 0x436   :  { %v3596_v22 = vpop.permute.xlu1 %1615 }
 0x437   :  { %v2137_v20 = vmul.f32 %v2586_v15, %v3596_v22 }
 0x438   :  { %1836 = vbcast.lane.b32.xlu1 %v1802_v37, 320  ;;  %1864 = vbcast.lane.b32.xlu0 %v1802_v37, 376 }
 0x439   :  { %v2264_v0 = vadd.f32 %v2263_v33, %v2137_v20  ;;  %v2600_v20 = vld [vmem:[#allocation11 + $0x50] sm:$0xff] }
 0x43a   :  { %v3599_v6 = vpop.permute.xlu1 %1619 }
 0x43c   :  { %1844 = vbcast.lane.b32.xlu1 %v1802_v37, 336  ;;  %1875 = vbcast.lane.b32.xlu0 %v3602_v28, 264 }
 0x43e   :  { %v3607_v18 = vpop.permute.xlu1 %1623 }
 0x43f   :  { %v1587_v17 = vpop.xlane.xlu0 %1586 }
 0x440   :  { %v1588_v58 = vadd.f32 %v1587_v17, %v1585_v11  ;;  %1852 = vbcast.lane.b32.xlu1 %v1802_v37, 352  ;;  %1883 = vbcast.lane.b32.xlu0 %v3602_v28, 280  ;;  %v2590_v11 = vld [vmem:[#allocation11 + $0x28] sm:$0xff]  ;;  %v2591_v17 = vld [vmem:[#allocation11 + $0xb0] sm:$0xff] }
 0x441   :  { %v2139_v22 = vmul.f32 %v2590_v11, %v3607_v18  ;;  %v2594_v18 = vld [vmem:[#allocation11 + $0x38] sm:$0xff] }
 0x442   :  { %1590 = vst.msk [vmem:[#allocation4] sm:$0xff] %vm149_vm0, %v1588_v58  ;;  %v3612_v16 = vpop.permute.xlu1 %1627 }
 0x443   :  { %v3614_v31 = vpop.permute.xlu0 %1639 }
 0x444   :  { %1860 = vbcast.lane.b32.xlu1 %v1802_v37, 368  ;;  %1891 = vbcast.lane.b32.xlu0 %v3602_v28, 296  ;;  %v2138_v37 = vmul.f32 %v2588_v12, %v3599_v6 }
 0x446   :  { %v3617_v39 = vpop.permute.xlu1 %1631 }
 0x447   :  { %v3619_v26 = vpop.permute.xlu0 %1647 }
 0x448   :  { %1871 = vbcast.lane.b32.xlu1 %v3602_v28, 256  ;;  %1899 = vbcast.lane.b32.xlu0 %v3602_v28, 312 }
 0x44a   :  { %v3623_v19 = vpop.permute.xlu1 %1635 }
 0x44b   :  { %v3625_v53 = vpop.permute.xlu0 %1655 }
 0x44c   :  { %1879 = vbcast.lane.b32.xlu1 %v3602_v28, 272  ;;  %1907 = vbcast.lane.b32.xlu0 %v3602_v28, 328 }
 0x44e   :  { %v3629_v10 = vpop.permute.xlu1 %1643 }
 0x44f   :  { %v3632_v13 = vpop.permute.xlu0 %1663 }
 0x450   :  { %1887 = vbcast.lane.b32.xlu1 %v3602_v28, 288  ;;  %1915 = vbcast.lane.b32.xlu0 %v3602_v28, 344 }
 0x452   :  { %v3636_v38 = vpop.permute.xlu1 %1651 }
 0x453   :  { %v1675_v45 = vpop.permute.xlu0 %1674 }
 0x454   :  { %1895 = vbcast.lane.b32.xlu1 %v3602_v28, 304  ;;  %1938 = vbcast.lane.b32.xlu0 %v3639_v34, 256  ;;  %v2151_v30 = vmul.f32 %v2580_v3, %v1675_v45  ;;  %v2265_v45 = vadd.f32 %v2264_v0, %v2138_v37 }
 0x456   :  { %v3644_v44 = vpop.permute.xlu1 %1659 }
 0x457   :  { %v1683_v51 = vpop.permute.xlu0 %1682 }
 0x458   :  { %1903 = vbcast.lane.b32.xlu1 %v3602_v28, 320  ;;  %2005 = vbcast.lane.b32.xlu0 %v3647_v49, 256  ;;  %v2153_v1 = vmul.f32 %v2585_v50, %v1683_v51 }
 0x45a   :  { %v1671_v14 = vpop.permute.xlu1 %1670 }
 0x45b   :  { %v2150_v36 = vmul.f32 %v2579_v40, %v1671_v14  ;;  %v1691_v9 = vpop.permute.xlu0 %1690  ;;  %v2592_v14 = vld [vmem:[#allocation11 + $0x30] sm:$0xff] }
 0x45c   :  { %1911 = vbcast.lane.b32.xlu1 %v3602_v28, 336  ;;  %1946 = vbcast.lane.b32.xlu0 %v3639_v34, 272  ;;  %v2155_v2 = vmul.f32 %v2589_v21, %v1691_v9  ;;  %v2140_v6 = vmul.f32 %v2592_v14, %v3612_v16  ;;  %v2266_v9 = vadd.f32 %v2265_v45, %v2139_v22  ;;  %v2604_v22 = vld [vmem:[#allocation11 + $0x58] sm:$0xff] }
 0x45d   :  { %v2283_v27 = vadd.f32 %v2151_v30, %v2150_v36  ;;  %v2141_v30 = vmul.f32 %v2594_v18, %v3617_v39 }
 0x45e   :  { %v1679_v48 = vpop.permute.xlu1 %1678 }
 0x45f   :  { %v2152_v41 = vmul.f32 %v2582_v29, %v1679_v48  ;;  %v1699_v47 = vpop.permute.xlu0 %1698  ;;  %v2595_v48 = vld [vmem:[#allocation11 + $0xc0] sm:$0xff] }
 0x460   :  { %1919 = vbcast.lane.b32.xlu1 %v3602_v28, 352  ;;  %2076 = vbcast.lane.b32.xlu0 %v3655_v55, 264  ;;  %v2157_v40 = vmul.f32 %v2593_v62, %v1699_v47  ;;  %v2596_v29 = vld [vmem:[#allocation11 + $0x40] sm:$0xff]  ;;  %v2607_v62 = vld [vmem:[#allocation11 + $0x110] sm:$0xff] }
 0x461   :  { %v2284_v7 = vadd.f32 %v2283_v27, %v2152_v41  ;;  %v2267_v27 = vadd.f32 %v2266_v9, %v2140_v6  ;;  %v2142_v16 = vmul.f32 %v2596_v29, %v3623_v19  ;;  %v2610_v29 = vld [vmem:[#allocation11 + $0x120] sm:$0xff] }
 0x462   :  { %v1687_v32 = vpop.permute.xlu1 %1686 }
 0x463   :  { %v2154_v57 = vmul.f32 %v2587_v63, %v1687_v32  ;;  %v2285_v25 = vadd.f32 %v2284_v7, %v2153_v1  ;;  %v1707_v60 = vpop.permute.xlu0 %1706  ;;  %v2268_v4 = vadd.f32 %v2267_v27, %v2141_v30  ;;  %v2598_v7 = vld [vmem:[#allocation11 + $0x48] sm:$0xff]  ;;  %v2144_v63 = vmul.f32 %v2600_v20, %v3629_v10 }
 0x464   :  { %1942 = vbcast.lane.b32.xlu1 %v3639_v34, 264  ;;  %1950 = vbcast.lane.b32.xlu0 %v3639_v34, 280  ;;  %v2159_v24 = vmul.f32 %v2597_v43, %v1707_v60  ;;  %v2143_v32 = vmul.f32 %v2598_v7, %v3614_v31  ;;  %v2601_v31 = vld [vmem:[#allocation11 + $0xd8] sm:$0xff]  ;;  %v2145_v10 = vmul.f32 %v2604_v22, %v3619_v26 }
 0x465   :  { %v2286_v46 = vadd.f32 %v2285_v25, %v2154_v57  ;;  %v2269_v39 = vadd.f32 %v2268_v4, %v2142_v16  ;;  %v2608_v26 = vld [vmem:[#allocation11 + $0x118] sm:$0xff]  ;;  %v2611_v4 = vld [vmem:[#allocation11 + $0x68] sm:$0xff] }
 0x466   :  { %v1695_v23 = vpop.permute.xlu1 %1694 }
 0x467   :  { %v2156_v58 = vmul.f32 %v2591_v17, %v1695_v23  ;;  %v2287_v54 = vadd.f32 %v2286_v46, %v2155_v2  ;;  %v1715_v61 = vpop.permute.xlu0 %1714  ;;  %v2270_v57 = vadd.f32 %v2269_v39, %v2143_v32  ;;  %v2602_v2 = vld [vmem:[#allocation11 + $0x108] sm:$0xff]  ;;  %v2603_v23 = vld [vmem:[#allocation11 + $0x100] sm:$0xff]  ;;  %v2612_v39 = vld [vmem:[#allocation11 + $0xf0] sm:$0xff] }
 0x468   :  { %2009 = vbcast.lane.b32.xlu1 %v3647_v49, 264  ;;  %2017 = vbcast.lane.b32.xlu0 %v3647_v49, 280  ;;  %v2161_v37 = vmul.f32 %v2601_v31, %v1715_v61  ;;  %v2605_v17 = vld [vmem:[#allocation11 + $0xe0] sm:$0xff]  ;;  %v2614_v32 = vld [vmem:[#allocation11 + $0x70] sm:$0xff]  ;;  %v2617_v31 = vld [vmem:[#allocation11 + $0xf8] sm:$0xff] }
 0x469   :  { %v2288_v51 = vadd.f32 %v2287_v54, %v2156_v58  ;;  %v2271_v60 = vadd.f32 %v2270_v57, %v2144_v63 }
 0x46a   :  { %v1703_v36 = vpop.permute.xlu1 %1702 }
 0x46b   :  { %v3670_v3 = vpop.permute.xlu0 %1722  ;;  %v2158_v5 = vmul.f32 %v2595_v48, %v1703_v36  ;;  %v2289_v56 = vadd.f32 %v2288_v51, %v2157_v40  ;;  %v2606_v51 = vld [vmem:[#allocation11 + $0x60] sm:$0xff]  ;;  %v2272_v14 = vadd.f32 %v2271_v60, %v2145_v10  ;;  %v2620_v10 = vld [vmem:[#allocation11 + $0x148] sm:$0xff] }
 0x46c   :  { %2072 = vbcast.lane.b32.xlu1 %v3655_v55, 256  ;;  %2084 = vbcast.lane.b32.xlu0 %v3655_v55, 280  ;;  %v2146_v61 = vmul.f32 %v2606_v51, %v3636_v38  ;;  %v2621_v51 = vld [vmem:[#allocation11 + $0x150] sm:$0xff] }
 0x46d   :  { %v2290_v35 = vadd.f32 %v2289_v56, %v2158_v5  ;;  %v2609_v5 = vld [vmem:[#allocation11 + $0xe8] sm:$0xff] }
 0x46e   :  { %v1711_v41 = vpop.permute.xlu1 %1710  ;;  %v2273_v48 = vadd.f32 %v2272_v14, %v2146_v61  ;;  %v2163_v56 = vmul.f32 %v2609_v5, %v3670_v3  ;;  %v2148_v3 = vmul.f32 %v2614_v32, %v3644_v44  ;;  %v2618_v44 = vld [vmem:[#allocation11 + $0x140] sm:$0xff] }
 0x46f   :  { %v3676_v47 = vpop.permute.xlu0 %1730  ;;  %v2160_v15 = vmul.f32 %v2599_v8, %v1711_v41  ;;  %v2291_v19 = vadd.f32 %v2290_v35, %v2159_v24  ;;  %v2147_v35 = vmul.f32 %v2611_v4, %v3625_v53 }
 0x470   :  { %2013 = vbcast.lane.b32.xlu1 %v3647_v49, 272  ;;  %1958 = vbcast.lane.b32.xlu0 %v3639_v34, 296 }
 0x471   :  { %v2292_v12 = vadd.f32 %v2291_v19, %v2160_v15  ;;  %v2274_v8 = vadd.f32 %v2273_v48, %v2147_v35  ;;  %v2615_v19 = vld [vmem:[#allocation11 + $0x130] sm:$0xff] }
 0x472   :  { %v1719_v50 = vpop.permute.xlu1 %1718 }
 0x473   :  { %v1742_v1 = vpop.permute.xlu0 %1741  ;;  %v2162_v58 = vmul.f32 %v2605_v17, %v1719_v50  ;;  %v2293_v54 = vadd.f32 %v2292_v12, %v2161_v37  ;;  %v2613_v50 = vld [vmem:[#allocation11 + $0x128] sm:$0xff]  ;;  %v2275_v60 = vadd.f32 %v2274_v8, %v2148_v3  ;;  %v2165_v37 = vmul.f32 %v2617_v31, %v3676_v47  ;;  %v2629_v31 = vld [vmem:[#allocation11 + $0x190] sm:$0xff] }
 0x474   :  { %2080 = vbcast.lane.b32.xlu1 %v3655_v55, 272  ;;  %2025 = vbcast.lane.b32.xlu0 %v3647_v49, 296  ;;  %v2167_v46 = vmul.f32 %v2602_v2, %v1742_v1  ;;  %v2627_v3 = vld [vmem:[#allocation11 + $0x188] sm:$0xff] }
 0x475   :  { %v2294_v9 = vadd.f32 %v2293_v54, %v2162_v58 }
 0x476   :  { %v1727_v25 = vpop.permute.xlu1 %1726 }
 0x477   :  { %v1750_v33 = vpop.permute.xlu0 %1749  ;;  %v2164_v43 = vmul.f32 %v2612_v39, %v1727_v25  ;;  %v2295_v24 = vadd.f32 %v2294_v9, %v2163_v56  ;;  %v2616_v25 = vld [vmem:[#allocation11 + $0x138] sm:$0xff]  ;;  %v2624_v56 = vld [vmem:[#allocation11 + $0x168] sm:$0xff] }
 0x478   :  { %1954 = vbcast.lane.b32.xlu1 %v3639_v34, 288  ;;  %2092 = vbcast.lane.b32.xlu0 %v3655_v55, 296  ;;  %v2169_v18 = vmul.f32 %v2608_v26, %v1750_v33  ;;  %v2623_v26 = vld [vmem:[#allocation11 + $0x160] sm:$0xff] }
 0x479   :  { %v2296_v53 = vadd.f32 %v2295_v24, %v2164_v43  ;;  %v2626_v24 = vld [vmem:[#allocation11 + $0x178] sm:$0xff] }
 0x47a   :  { %v1738_v21 = vpop.permute.xlu1 %1737 }
 0x47b   :  { %v2166_v0 = vmul.f32 %v2603_v23, %v1738_v21  ;;  %v1758_v11 = vpop.permute.xlu0 %1757  ;;  %v2297_v22 = vadd.f32 %v2296_v53, %v2165_v37 }
 0x47c   :  { %2021 = vbcast.lane.b32.xlu1 %v3647_v49, 288  ;;  %1966 = vbcast.lane.b32.xlu0 %v3639_v34, 312  ;;  %v2171_v1 = vmul.f32 %v2613_v50, %v1758_v11 }
 0x47d   :  { %v2304_v45 = vadd.f32 %v2167_v46, %v2166_v0  ;;  %v2619_v0 = vld [vmem:[#allocation11 + $0x78] sm:$0xff] }
 0x47e   :  { %v1746_v6 = vpop.permute.xlu1 %1745  ;;  %v2149_v11 = vmul.f32 %v2619_v0, %v3632_v13  ;;  %v2622_v13 = vld [vmem:[#allocation11 + $0x158] sm:$0xff] }
 0x47f   :  { %v2168_v40 = vmul.f32 %v2607_v62, %v1746_v6  ;;  %v1766_v36 = vpop.permute.xlu0 %1765  ;;  %v2298_v6 = vrot.slane %v2297_v22, 4 }
 0x480   :  { %2088 = vbcast.lane.b32.xlu1 %v3655_v55, 288  ;;  %2033 = vbcast.lane.b32.xlu0 %v3647_v49, 312  ;;  %v2173_v33 = vmul.f32 %v2616_v25, %v1766_v36  ;;  %v2276_v54 = vadd.f32 %v2275_v60, %v2149_v11 }
 0x481   :  { %v2305_v30 = vadd.f32 %v2304_v45, %v2168_v40  ;;  %v2299_v5 = vadd.f32 %v2298_v6, %v2297_v22 }
 0x482   :  { %v1754_v27 = vpop.permute.xlu1 %1753  ;;  %v2277_v36 = vrot.slane %v2276_v54, 4 }
 0x483   :  { %v2170_v38 = vmul.f32 %v2610_v29, %v1754_v27  ;;  %v2306_v16 = vadd.f32 %v2305_v30, %v2169_v18  ;;  %v1774_v41 = vpop.permute.xlu0 %1773  ;;  %v2300_v43 = vrot.slane %v2299_v5, 2 }
 0x484   :  { %1962 = vbcast.lane.b32.xlu1 %v3639_v34, 304  ;;  %2100 = vbcast.lane.b32.xlu0 %v3655_v55, 312  ;;  %v2175_v17 = vmul.f32 %v2620_v10, %v1774_v41  ;;  %v2625_v41 = vld [vmem:[#allocation11 + $0x170] sm:$0xff] }
 0x485   :  { %v2307_v7 = vadd.f32 %v2306_v16, %v2170_v38  ;;  %v2278_v38 = vadd.f32 %v2277_v36, %v2276_v54  ;;  %v2633_v36 = vld [vmem:[#allocation11 + $0x1b0] sm:$0xff] }
 0x486   :  { %v1762_v15 = vpop.permute.xlu1 %1761 }
 0x487   :  { %v2172_v20 = vmul.f32 %v2615_v19, %v1762_v15  ;;  %v2308_v63 = vadd.f32 %v2307_v7, %v2171_v1  ;;  %v1782_v57 = vpop.permute.xlu0 %1781  ;;  %v2279_v7 = vrot.slane %v2278_v38, 2  ;;  %v2628_v19 = vld [vmem:[#allocation11 + $0x180] sm:$0xff] }
 0x488   :  { %2029 = vbcast.lane.b32.xlu1 %v3647_v49, 304  ;;  %1974 = vbcast.lane.b32.xlu0 %v3639_v34, 328  ;;  %v2177_v62 = vmul.f32 %v2622_v13, %v1782_v57  ;;  %v2301_v57 = vadd.f32 %v2300_v43, %v2299_v5 }
 0x489   :  { %v2309_v12 = vadd.f32 %v2308_v63, %v2172_v20 }
 0x48a   :  { %v1770_v21 = vpop.permute.xlu1 %1769 }
 0x48b   :  { %v2174_v2 = vmul.f32 %v2618_v44, %v1770_v21  ;;  %v2310_v46 = vadd.f32 %v2309_v12, %v2173_v33  ;;  %v1790_v23 = vpop.permute.xlu0 %1789  ;;  %v2280_v33 = vadd.f32 %v2279_v7, %v2278_v38  ;;  %v2302_v44 = vrot.slane %v2301_v57, 1  ;;  %v2452_v38 = vld [vmem:[#allocation4] sm:$0xff] }
 0x48c   :  { %2096 = vbcast.lane.b32.xlu1 %v3655_v55, 304  ;;  %2041 = vbcast.lane.b32.xlu0 %v3647_v49, 328  ;;  %v2179_v27 = vmul.f32 %v2624_v56, %v1790_v23  ;;  %2575 = vrcp.f32 %v2452_v38 }
 0x48d   :  { %v2311_v58 = vadd.f32 %v2310_v46, %v2174_v2  ;;  %v2630_v46 = vld [vmem:[#allocation11 + $0x198] sm:$0xff]  ;;  %v2281_v11 = vrot.slane %v2280_v33, 1 }
 0x48e   :  { %v1778_v45 = vpop.permute.xlu1 %1777 }
 0x48f   :  { %v2176_v47 = vmul.f32 %v2621_v51, %v1778_v45  ;;  %v2312_v61 = vadd.f32 %v2311_v58, %v2175_v17  ;;  %v1798_v14 = vpop.permute.xlu0 %1797  ;;  %v2631_v17 = vld [vmem:[#allocation11 + $0x1a0] sm:$0xff]  ;;  %v2303_v51 = vadd.f32 %v2302_v44, %v2301_v57  ;;  %v2282_v13 = vadd.f32 %v2281_v11, %v2280_v33  ;;  %v2640_v33 = vld [vmem:[#allocation11 + $0x1e8] sm:$0xff] }
 0x490   :  { %1970 = vbcast.lane.b32.xlu1 %v3639_v34, 320  ;;  %2108 = vbcast.lane.b32.xlu0 %v3655_v55, 328  ;;  %v2181_v50 = vmul.f32 %v2626_v24, %v1798_v14 }
 0x491   :  { %v2313_v40 = vadd.f32 %v2312_v61, %v2176_v47  ;;  %v2632_v61 = vld [vmem:[#allocation11 + $0x1a8] sm:$0xff] }
 0x492   :  { %v1786_v9 = vpop.permute.xlu1 %1785 }
 0x493   :  { %v2178_v18 = vmul.f32 %v2623_v26, %v1786_v9  ;;  %v2314_v30 = vadd.f32 %v2313_v40, %v2177_v62  ;;  %v1809_v48 = vpop.permute.xlu0 %1808 }
 0x494   :  { %2037 = vbcast.lane.b32.xlu1 %v3647_v49, 320  ;;  %1982 = vbcast.lane.b32.xlu0 %v3639_v34, 344  ;;  %v2183_v8 = vmul.f32 %v2627_v3, %v1809_v48  ;;  %v2634_v48 = vld [vmem:[#allocation11 + $0x1b8] sm:$0xff] }
 0x495   :  { %v2315_v29 = vadd.f32 %v2314_v30, %v2178_v18  ;;  %v2438_v30 = vsel %vm3877_vm8, %v2303_v51, %v2282_v13 }
 0x496   :  { %v1794_v16 = vpop.permute.xlu1 %1793 }
 0x497   :  { %v2180_v4 = vmul.f32 %v2625_v41, %v1794_v16  ;;  %v2316_v35 = vadd.f32 %v2315_v29, %v2179_v27  ;;  %v1817_v39 = vpop.permute.xlu0 %1816  ;;  %v2635_v16 = vld [vmem:[#allocation11 + $0x1c0] sm:$0xff] }
 0x498   :  { %2104 = vbcast.lane.b32.xlu1 %v3655_v55, 320  ;;  %2049 = vbcast.lane.b32.xlu0 %v3647_v49, 344  ;;  %v2185_v23 = vmul.f32 %v2630_v46, %v1817_v39  ;;  %v2636_v39 = vld [vmem:[#allocation11 + $0x1c8] sm:$0xff]  ;;  %v2642_v46 = vld [vmem:[#allocation11 + $0x1f8] sm:$0xff] }
 0x499   :  { %v2317_v1 = vadd.f32 %v2316_v35, %v2180_v4 }
 0x49a   :  { %v1805_v32 = vpop.permute.xlu1 %1804 }
 0x49b   :  { %v2318_v15 = vadd.f32 %v2317_v1, %v2181_v50  ;;  %v2182_v20 = vmul.f32 %v2628_v19, %v1805_v32  ;;  %v1825_v63 = vpop.permute.xlu0 %1824  ;;  %v2637_v1 = vld [vmem:[#allocation11 + $0x1d0] sm:$0xff] }
 0x49c   :  { %1978 = vbcast.lane.b32.xlu1 %v3639_v34, 336  ;;  %2116 = vbcast.lane.b32.xlu0 %v3655_v55, 344  ;;  %v2187_v14 = vmul.f32 %v2632_v61, %v1825_v63  ;;  %v2639_v63 = vld [vmem:[#allocation11 + $0x1e0] sm:$0xff] }
 0x49d   :  { %v2319_v53 = vrot.slane %v2318_v15, 4  ;;  %v2325_v25 = vadd.f32 %v2183_v8, %v2182_v20  ;;  %v2638_v8 = vld [vmem:[#allocation11 + $0x1d8] sm:$0xff] }
 0x49e   :  { %v1813_v12 = vpop.permute.xlu1 %1812 }
 0x49f   :  { %v2320_v60 = vadd.f32 %v2319_v53, %v2318_v15  ;;  %v2184_v37 = vmul.f32 %v2629_v31, %v1813_v12  ;;  %v1833_v21 = vpop.permute.xlu0 %1832 }
 0x4a0   :  { %2045 = vbcast.lane.b32.xlu1 %v3647_v49, 336  ;;  %2053 = vbcast.lane.b32.xlu0 %v3647_v49, 352  ;;  %v2189_v5 = vmul.f32 %v2634_v48, %v1833_v21 }
 0x4a1   :  { %v2321_v2 = vrot.slane %v2320_v60, 2  ;;  %v2326_v0 = vadd.f32 %v2325_v25, %v2184_v37  ;;  %v2641_v37 = vld [vmem:[#allocation11 + $0x1f0] sm:$0xff] }
 0x4a2   :  { %v1821_v22 = vpop.permute.xlu1 %1820 }
 0x4a3   :  { %v2322_v10 = vadd.f32 %v2321_v2, %v2320_v60  ;;  %v2186_v58 = vmul.f32 %v2631_v17, %v1821_v22  ;;  %v2327_v54 = vadd.f32 %v2326_v0, %v2185_v23  ;;  %v1841_v45 = vpop.permute.xlu0 %1840  ;;  %v2576_v22 = vpop.eup %2575 }
 0x4a4   :  { %2112 = vbcast.lane.b32.xlu1 %v3655_v55, 336  ;;  %2120 = vbcast.lane.b32.xlu0 %v3655_v55, 352  ;;  %v2191_v43 = vmul.f32 %v2636_v39, %v1841_v45 }
 0x4a5   :  { %v2323_v47 = vrot.slane %v2322_v10, 1  ;;  %v2328_v6 = vadd.f32 %v2327_v54, %v2186_v58  ;;  %v2644_v58 = vld [vmem:[#allocation11 + $0x200] sm:$0xff] }
 0x4a6   :  { %v1829_v62 = vpop.permute.xlu1 %1828 }
 0x4a7   :  { %v2324_v40 = vadd.f32 %v2323_v47, %v2322_v10  ;;  %v2188_v9 = vmul.f32 %v2633_v36, %v1829_v62  ;;  %v2329_v26 = vadd.f32 %v2328_v6, %v2187_v14  ;;  %v1849_v18 = vpop.permute.xlu0 %1848  ;;  %v2645_v14 = vld [vmem:[#allocation11 + $0x210] sm:$0xff] }
 0x4a8   :  { %1986 = vbcast.lane.b32.xlu1 %v3639_v34, 352  ;;  %2057 = vbcast.lane.b32.xlu0 %v3647_v49, 360  ;;  %v2193_v15 = vmul.f32 %v2638_v8, %v1849_v18  ;;  %v2651_v8 = vld [vmem:[#allocation11 + $0x240] sm:$0xff] }
 0x4a9   :  { %v2330_v56 = vadd.f32 %v2329_v26, %v2188_v9  ;;  %v3719_v27 = vsel %vm1554_vm1, %v2324_v40, %v2438_v30  ;;  %v2646_v40 = vld [vmem:[#allocation11 + $0x218] sm:$0xff]  ;;  %v2647_v30 = vld [vmem:[#allocation11 + $0x220] sm:$0xff] }
 0x4aa   :  { %v1837_v29 = vpop.permute.xlu1 %1836 }
 0x4ab   :  { %v2190_v41 = vmul.f32 %v2635_v16, %v1837_v29  ;;  %v2331_v4 = vadd.f32 %v2330_v56, %v2189_v5  ;;  %v1857_v35 = vpop.permute.xlu0 %1856  ;;  %v2648_v29 = vld [vmem:[#allocation11 + $0x228] sm:$0xff] }
 0x4ac   :  { %1923 = vbcast.lane.b32.xlu1 %v3602_v28, 360  ;;  %2124 = vbcast.lane.b32.xlu0 %v3655_v55, 360  ;;  %v2195_v12 = vmul.f32 %v2640_v33, %v1857_v35  ;;  %v2649_v35 = vld [vmem:[#allocation11 + $0x230] sm:$0xff] }
 0x4ad   :  { %v2332_v24 = vadd.f32 %v2331_v4, %v2190_v41 }
 0x4ae   :  { %v1845_v50 = vpop.permute.xlu1 %1844 }
 0x4af   :  { %v2192_v7 = vmul.f32 %v2637_v1, %v1845_v50  ;;  %v2333_v32 = vadd.f32 %v2332_v24, %v2191_v43  ;;  %v1865_v3 = vpop.permute.xlu0 %1864  ;;  %v2650_v50 = vld [vmem:[#allocation11 + $0x238] sm:$0xff] }
 0x4b0   :  { %1990 = vbcast.lane.b32.xlu1 %v3639_v34, 360  ;;  %1931 = vbcast.lane.b32.xlu0 %v3602_v28, 376  ;;  %v2197_v23 = vmul.f32 %v2642_v46, %v1865_v3 }
 0x4b1   :  { %v2334_v19 = vadd.f32 %v2333_v32, %v2192_v7 }
 0x4b2   :  { %v1853_v20 = vpop.permute.xlu1 %1852 }
 0x4b3   :  { %v2194_v57 = vmul.f32 %v2639_v63, %v1853_v20  ;;  %v2335_v53 = vadd.f32 %v2334_v19, %v2193_v15  ;;  %v1876_v25 = vpop.permute.xlu0 %1875  ;;  %v2652_v20 = vld [vmem:[#allocation11 + $0x248] sm:$0xff] }
 0x4b4   :  { %1927 = vbcast.lane.b32.xlu1 %v3602_v28, 368  ;;  %1998 = vbcast.lane.b32.xlu0 %v3639_v34, 376  ;;  %v2643_v28 = vld [vmem:[#allocation11 + $0x208] sm:$0xff] }
 0x4b5   :  { %v2336_v60 = vadd.f32 %v2335_v53, %v2194_v57  ;;  %v2199_v10 = vmul.f32 %v2643_v28, %v1876_v25  ;;  %v2653_v25 = vld [vmem:[#allocation11 + $0x250] sm:$0xff] }
 0x4b6   :  { %v1861_v31 = vpop.permute.xlu1 %1860 }
 0x4b7   :  { %v2196_v21 = vmul.f32 %v2641_v37, %v1861_v31  ;;  %v2337_v44 = vadd.f32 %v2336_v60, %v2195_v12  ;;  %v1884_v2 = vpop.permute.xlu0 %1883  ;;  %v2654_v31 = vld [vmem:[#allocation11 + $0x258] sm:$0xff] }
 0x4b8   :  { %1994 = vbcast.lane.b32.xlu1 %v3639_v34, 368  ;;  %2065 = vbcast.lane.b32.xlu0 %v3647_v49, 376  ;;  %v2201_v36 = vmul.f32 %v2646_v40, %v1884_v2  ;;  %v2655_v2 = vld [vmem:[#allocation11 + $0x260] sm:$0xff] }
 0x4b9   :  { %v2338_v0 = vadd.f32 %v2337_v44, %v2196_v21 }
 0x4ba   :  { %v1872_v11 = vpop.permute.xlu1 %1871 }
 0x4bb   :  { %v2339_v17 = vadd.f32 %v2338_v0, %v2197_v23  ;;  %v2198_v54 = vmul.f32 %v2644_v58, %v1872_v11  ;;  %v1892_v45 = vpop.permute.xlu0 %1891 }
 0x4bc   :  { %2061 = vbcast.lane.b32.xlu1 %v3647_v49, 368  ;;  %2458 = vperm.xlu0 %2570, %v2576_v22   ;;  %v2203_v38 = vmul.f32 %v2648_v29, %v1892_v45  ;;  %v2656_v22 = vld [vmem:[#allocation11 + $0x280] sm:$0xff] }
 0x4bd   :  { %v2340_v51 = vrot.slane %v2339_v17, 4  ;;  %v2346_v47 = vadd.f32 %v2199_v10, %v2198_v54  ;;  %v2657_v10 = vld [vmem:[#allocation11 + $0x288] sm:$0xff]  ;;  %v2658_v54 = vld [vmem:[#allocation11 + $0x290] sm:$0xff] }
 0x4be   :  { %v1880_v61 = vpop.permute.xlu1 %1879 }
 0x4bf   :  { %v2341_v34 = vadd.f32 %v2340_v51, %v2339_v17  ;;  %v2200_v6 = vmul.f32 %v2645_v14, %v1880_v61  ;;  %v1900_v13 = vpop.permute.xlu0 %1899 }
 0x4c0   :  { %2128 = vbcast.lane.b32.xlu1 %v3655_v55, 368  ;;  %v2205_v1 = vmul.f32 %v2650_v50, %v1900_v13 }
 0x4c1   :  { %v2342_v62 = vrot.slane %v2341_v34, 2  ;;  %v2347_v9 = vadd.f32 %v2346_v47, %v2200_v6 }
 0x4c2   :  { %v1888_v26 = vpop.permute.xlu1 %1887 }
 0x4c3   :  { %v2343_v18 = vadd.f32 %v2342_v62, %v2341_v34  ;;  %v2202_v48 = vmul.f32 %v2647_v30, %v1888_v26  ;;  %v2348_v5 = vadd.f32 %v2347_v9, %v2201_v36  ;;  %v1908_v49 = vpop.permute.xlu0 %1907 }
 0x4c4   :  { %2132 = vbcast.lane.b32.xlu1 %v3655_v55, 376  ;;  %v2207_v63 = vmul.f32 %v2652_v20, %v1908_v49 }
 0x4c5   :  { %v2344_v56 = vrot.slane %v2343_v18, 1  ;;  %v2349_v16 = vadd.f32 %v2348_v5, %v2202_v48 }
 0x4c6   :  { %v1896_v41 = vpop.permute.xlu1 %1895 }
 0x4c7   :  { %v2345_v4 = vadd.f32 %v2344_v56, %v2343_v18  ;;  %v2204_v39 = vmul.f32 %v2649_v35, %v1896_v41  ;;  %v2350_v43 = vadd.f32 %v2349_v16, %v2203_v38  ;;  %v1916_v24 = vpop.permute.xlu0 %1915 }
 0x4c8   :  { %v2209_v37 = vmul.f32 %v2654_v31, %v1916_v24  ;;  %v2665_v31 = vld [vmem:[#allocation11 + $0x388] sm:$0xff] }
 0x4c9   :  { %v2351_v7 = vadd.f32 %v2350_v43, %v2204_v39  ;;  %v3734_v32 = vsel %vm1556_vm2, %v2345_v4, %v3719_v27  ;;  %v2659_v43 = vld [vmem:[#allocation11 + $0x308] sm:$0xff] }
 0x4ca   :  { %v1904_v3 = vpop.permute.xlu1 %1903 }
 0x4cb   :  { %v2206_v55 = vmul.f32 %v2651_v8, %v1904_v3  ;;  %v2352_v15 = vadd.f32 %v2351_v7, %v2205_v1  ;;  %v1939_v19 = vpop.permute.xlu0 %1938  ;;  %v2660_v1 = vld [vmem:[#allocation11 + $0x300] sm:$0xff]  ;;  %v2661_v3 = vld [vmem:[#allocation11 + $0x310] sm:$0xff] }
 0x4cc   :  { %v2214_v28 = vmul.f32 %v2656_v22, %v1939_v19  ;;  %v2662_v19 = vld [vmem:[#allocation11 + $0x298] sm:$0xff] }
 0x4cd   :  { %v2353_v57 = vadd.f32 %v2352_v15, %v2206_v55 }
 0x4ce   :  { %v1912_v53 = vpop.permute.xlu1 %1911 }
 0x4cf   :  { %v2208_v33 = vmul.f32 %v2653_v25, %v1912_v53  ;;  %v2354_v12 = vadd.f32 %v2353_v57, %v2207_v63  ;;  %v2006_v60 = vpop.permute.xlu0 %2005  ;;  %v2663_v57 = vld [vmem:[#allocation11 + $0x380] sm:$0xff] }
 0x4d0   :  { %v2230_v7 = vmul.f32 %v2660_v1, %v2006_v60  ;;  %v2674_v1 = vld [vmem:[#allocation11 + $0x330] sm:$0xff] }
 0x4d1   :  { %v2355_v21 = vadd.f32 %v2354_v12, %v2208_v33  ;;  %v2664_v33 = vld [vmem:[#allocation11 + $0x2a0] sm:$0xff] }
 0x4d2   :  { %v1920_v44 = vpop.permute.xlu1 %1919 }
 0x4d3   :  { %v2210_v27 = vmul.f32 %v2655_v2, %v1920_v44  ;;  %v2356_v46 = vadd.f32 %v2355_v21, %v2209_v37  ;;  %v1947_v23 = vpop.permute.xlu0 %1946  ;;  %v2666_v21 = vld [vmem:[#allocation11 + $0x390] sm:$0xff] }
 0x4d4   :  { %v2216_v45 = vmul.f32 %v2658_v54, %v1947_v23  ;;  %v2668_v23 = vld [vmem:[#allocation11 + $0x320] sm:$0xff] }
 0x4d5   :  { %v3736_v0 = vadd.f32 %v2356_v46, %v2210_v27  ;;  %v2667_v27 = vld [vmem:[#allocation11 + $0x318] sm:$0xff] }
 0x4d6   :  { %v1943_v11 = vpop.permute.xlu1 %1942 }
 0x4d7   :  { %v2215_v17 = vmul.f32 %v2657_v10, %v1943_v11  ;;  %v2077_v58 = vpop.permute.xlu0 %2076 }
 0x4d8   :  { %v2247_v37 = vmul.f32 %v2665_v31, %v2077_v58  ;;  %v2679_v31 = vld [vmem:[#allocation11 + $0x338] sm:$0xff] }
 0x4d9   :  { %v2367_v51 = vadd.f32 %v2215_v17, %v2214_v28 }
 0x4da   :  { %v2010_v47 = vpop.permute.xlu1 %2009 }
 0x4db   :  { %v2368_v61 = vadd.f32 %v2367_v51, %v2216_v45  ;;  %v1951_v34 = vpop.permute.xlu0 %1950  ;;  %v2231_v24 = vmul.f32 %v2659_v43, %v2010_v47  ;;  %v2669_v51 = vld [vmem:[#allocation11 + $0x2a8] sm:$0xff] }
 0x4dc   :  { %v2217_v20 = vmul.f32 %v2662_v19, %v1951_v34  ;;  %v2673_v43 = vld [vmem:[#allocation11 + $0x328] sm:$0xff] }
 0x4dd   :  { %v2388_v15 = vadd.f32 %v2231_v24, %v2230_v7 }
 0x4de   :  { %v2073_v14 = vpop.permute.xlu1 %2072  ;;  %v2369_v60 = vadd.f32 %v2368_v61, %v2217_v20 }
 0x4df   :  { %v2018_v6 = vpop.permute.xlu0 %2017  ;;  %v2246_v53 = vmul.f32 %v2663_v57, %v2073_v14  ;;  %v2670_v14 = vld [vmem:[#allocation11 + $0x2b0] sm:$0xff]  ;;  %v2675_v57 = vld [vmem:[#allocation11 + $0x2b8] sm:$0xff] }
 0x4e0   :  { %v2233_v46 = vmul.f32 %v2667_v27, %v2018_v6 }
 0x4e1   :  { %v2409_v28 = vadd.f32 %v2247_v37, %v2246_v53 }
 0x4e2   :  { %v2014_v13 = vpop.permute.xlu1 %2013 }
 0x4e3   :  { %v2085_v62 = vpop.permute.xlu0 %2084  ;;  %v2232_v8 = vmul.f32 %v2661_v3, %v2014_v13 }
 0x4e5   :  { %v2389_v25 = vadd.f32 %v2388_v15, %v2232_v8 }
 0x4e6   :  { %v2081_v40 = vpop.permute.xlu1 %2080 }
 0x4e7   :  { %v1959_v36 = vpop.permute.xlu0 %1958  ;;  %v2248_v44 = vmul.f32 %v2666_v21, %v2081_v40  ;;  %v2390_v17 = vadd.f32 %v2389_v25, %v2233_v46  ;;  %v2671_v40 = vld [vmem:[#allocation11 + $0x398] sm:$0xff]  ;;  %v2676_v25 = vld [vmem:[#allocation11 + $0x2c0] sm:$0xff] }
 0x4e8   :  { %v2219_v47 = vmul.f32 %v2669_v51, %v1959_v36  ;;  %v2249_v61 = vmul.f32 %v2671_v40, %v2085_v62  ;;  %v2683_v51 = vld [vmem:[#allocation11 + $0x3b8] sm:$0xff]  ;;  %v2686_v40 = vld [vmem:[#allocation11 + $0x350] sm:$0xff] }
 0x4e9   :  { %v2410_v54 = vadd.f32 %v2409_v28, %v2248_v44  ;;  %v2680_v44 = vld [vmem:[#allocation11 + $0x340] sm:$0xff]  ;;  %v2681_v28 = vld [vmem:[#allocation11 + $0x2c8] sm:$0xff] }
 0x4ea   :  { %v1955_v9 = vpop.permute.xlu1 %1954 }
 0x4eb   :  { %v2026_v26 = vpop.permute.xlu0 %2025  ;;  %v2218_v12 = vmul.f32 %v2664_v33, %v1955_v9  ;;  %v2672_v9 = vld [vmem:[#allocation11 + $0x3a0] sm:$0xff]  ;;  %v2411_v3 = vadd.f32 %v2410_v54, %v2249_v61  ;;  %v2677_v33 = vld [vmem:[#allocation11 + $0x3a8] sm:$0xff] }
 0x4ed   :  { %v2370_v10 = vadd.f32 %v2369_v60, %v2218_v12 }
 0x4ee   :  { %v2022_v18 = vpop.permute.xlu1 %2021 }
 0x4ef   :  { %v3738_v30 = vpop.permute.xlu0 %2092  ;;  %v2234_v11 = vmul.f32 %v2668_v23, %v2022_v18  ;;  %v2235_v18 = vmul.f32 %v2673_v43, %v2026_v26  ;;  %v2371_v24 = vadd.f32 %v2370_v10, %v2219_v47  ;;  %v2678_v26 = vld [vmem:[#allocation11 + $0x3b0] sm:$0xff]  ;;  %v2684_v47 = vld [vmem:[#allocation11 + $0x3c0] sm:$0xff] }
 0x4f1   :  { %v2391_v34 = vadd.f32 %v2390_v17, %v2234_v11 }
 0x4f2   :  { %v2089_v48 = vpop.permute.xlu1 %2088 }
 0x4f3   :  { %v3740_v5 = vpop.permute.xlu0 %1966  ;;  %v2250_v6 = vmul.f32 %v2672_v9, %v2089_v48  ;;  %v2392_v19 = vadd.f32 %v2391_v34, %v2235_v18  ;;  %v2251_v48 = vmul.f32 %v2677_v33, %v3738_v30  ;;  %v2685_v34 = vld [vmem:[#allocation11 + $0x348] sm:$0xff]  ;;  %v2470_v9 = vsub.f32 %v3569_v59, %v3588_v42  ;;  %v2692_v42 = vld [vmem:[#allocation11 + $0x3d0] sm:$0xff] }
 0x4f4   :  { %v2687_v18 = vld [vmem:[#allocation11 + $0x268] sm:$0xff] }
 0x4f5   :  { %v2412_v36 = vadd.f32 %v2411_v3, %v2250_v6  ;;  %v2693_v33 = vld [vmem:[#allocation11 + $0x2e8] sm:$0xff] }
 0x4f6   :  { %v1963_v49 = vpop.permute.xlu1 %1962 }
 0x4f7   :  { %v3742_v56 = vpop.permute.xlu0 %2033  ;;  %v2220_v58 = vmul.f32 %v2670_v14, %v1963_v49  ;;  %v2221_v49 = vmul.f32 %v2675_v57, %v3740_v5  ;;  %v2413_v5 = vadd.f32 %v2412_v36, %v2251_v48  ;;  %v2690_v36 = vld [vmem:[#allocation11 + $0x3c8] sm:$0xff]  ;;  %v2691_v57 = vld [vmem:[#allocation11 + $0x358] sm:$0xff] }
 0x4f8   :  { %v2237_v37 = vmul.f32 %v2679_v31, %v3742_v56 }
 0x4f9   :  { %v2372_v15 = vadd.f32 %v2371_v24, %v2220_v58 }
 0x4fa   :  { %v2030_v29 = vpop.permute.xlu1 %2029 }
 0x4fb   :  { %v3744_v38 = vpop.permute.xlu0 %2100  ;;  %v2236_v7 = vmul.f32 %v2674_v1, %v2030_v29  ;;  %v2373_v21 = vadd.f32 %v2372_v15, %v2221_v49  ;;  %v2689_v15 = vld [vmem:[#allocation11 + $0x2e0] sm:$0xff] }
 0x4fc   :  { %v2253_v56 = vmul.f32 %v2683_v51, %v3744_v38 }
 0x4fd   :  { %v2393_v53 = vadd.f32 %v2392_v19, %v2236_v7  ;;  %v2688_v7 = vld [vmem:[#allocation11 + $0x2d8] sm:$0xff]  ;;  %v2471_v19 = vmul.f32 1.442695, %v2470_v9  ;;  %v2702_v9 = vld [vmem:[#allocation11 + $0x370] sm:$0xff] }
 0x4fe   :  { %v3746_v16 = vpop.permute.xlu1 %2096 }
 0x4ff   :  { %v3748_v41 = vpop.permute.xlu0 %1974  ;;  %v2252_v12 = vmul.f32 %v2678_v26, %v3746_v16  ;;  %v2394_v23 = vadd.f32 %v2393_v53, %v2237_v37  ;;  %v2682_v16 = vld [vmem:[#allocation11 + $0x2d0] sm:$0xff]  ;;  %2577 = vpow2.f32 %v2471_v19 }
 0x500   :  { %v2223_v30 = vmul.f32 %v2681_v28, %v3748_v41  ;;  %v2694_v26 = vld [vmem:[#allocation11 + $0x270] sm:$0xff] }
 0x502   :  { %v1971_v4 = vpop.permute.xlu1 %1970 }
 0x503   :  { %v3750_v35 = vpop.permute.xlu0 %2041  ;;  %v2222_v62 = vmul.f32 %v2676_v25, %v1971_v4  ;;  %v2414_v4 = vadd.f32 %v2413_v5, %v2252_v12 }
 0x504   :  { %v2239_v14 = vmul.f32 %v2685_v34, %v3750_v35  ;;  %v2701_v34 = vld [vmem:[#allocation11 + $0x3e0] sm:$0xff] }
 0x505   :  { %v2374_v46 = vadd.f32 %v2373_v21, %v2222_v62  ;;  %v2415_v41 = vadd.f32 %v2414_v4, %v2253_v56 }
 0x506   :  { %v3752_v39 = vpop.permute.xlu1 %2037 }
 0x507   :  { %v3754_v50 = vpop.permute.xlu0 %2108  ;;  %v2238_v60 = vmul.f32 %v2680_v44, %v3752_v39  ;;  %v2375_v58 = vadd.f32 %v2374_v46, %v2223_v30  ;;  %v2696_v44 = vld [vmem:[#allocation11 + $0x360] sm:$0xff]  ;;  %v2697_v46 = vld [vmem:[#allocation11 + $0x368] sm:$0xff] }
 0x509   :  { %v2395_v10 = vadd.f32 %v2394_v23, %v2238_v60 }
 0x50a   :  { %v3756_v55 = vpop.permute.xlu1 %2104 }
 0x50b   :  { %v3758_v63 = vpop.permute.xlu0 %1982  ;;  %v2254_v39 = vmul.f32 %v2684_v47, %v3756_v55 }
 0x50c   :  { %v2225_v55 = vmul.f32 %v2688_v7, %v3758_v63 }
 0x50d   :  { %v2416_v38 = vadd.f32 %v2415_v41, %v2254_v39 }
 0x50e   :  { %v1979_v2 = vpop.permute.xlu1 %1978 }
 0x50f   :  { %v3760_v22 = vpop.permute.xlu0 %2049  ;;  %v2224_v17 = vmul.f32 %v2682_v16, %v1979_v2  ;;  %v2396_v2 = vadd.f32 %v2395_v10, %v2239_v14  ;;  %v2699_v10 = vld [vmem:[#allocation11 + $0x3d8] sm:$0xff] }
 0x510   :  { %v2241_v59 = vmul.f32 %v2691_v57, %v3760_v22 }
 0x511   :  { %v2376_v43 = vadd.f32 %v2375_v58, %v2224_v17  ;;  %v2700_v17 = vld [vmem:[#allocation11 + $0x2f8] sm:$0xff] }
 0x512   :  { %v2046_v45 = vpop.permute.xlu1 %2045 }
 0x513   :  { %v3762_v13 = vpop.permute.xlu0 %2116  ;;  %v2240_v61 = vmul.f32 %v2686_v40, %v2046_v45  ;;  %v2255_v45 = vmul.f32 %v2690_v36, %v3754_v50  ;;  %v2377_v25 = vadd.f32 %v2376_v43, %v2225_v55  ;;  %v2703_v43 = vld [vmem:[#allocation11 + $0x3e8] sm:$0xff] }
 0x514   :  { %v2257_v16 = vmul.f32 %v2699_v10, %v3762_v13 }
 0x515   :  { %v2397_v3 = vadd.f32 %v2396_v2, %v2240_v61  ;;  %v2417_v31 = vadd.f32 %v2416_v38, %v2255_v45 }
 0x516   :  { %v2113_v8 = vpop.permute.xlu1 %2112 }
 0x517   :  { %v3764_v20 = vpop.permute.xlu0 %2053  ;;  %v2256_v49 = vmul.f32 %v2692_v42, %v2113_v8  ;;  %v2398_v21 = vadd.f32 %v2397_v3, %v2241_v59 }
 0x518   :  { %v2242_v50 = vmul.f32 %v2696_v44, %v3764_v20 }
 0x519   :  { %v2418_v8 = vadd.f32 %v2417_v31, %v2256_v49 }
 0x51a   :  { %v1987_v29 = vpop.permute.xlu1 %1986  ;;  %v2399_v56 = vadd.f32 %v2398_v21, %v2242_v50 }
 0x51b   :  { %v3771_v27 = vpop.permute.xlu0 %2120  ;;  %v2226_v35 = vmul.f32 %v2689_v15, %v1987_v29  ;;  %v2695_v29 = vld [vmem:[#allocation11 + $0x278] sm:$0xff]  ;;  %v2419_v39 = vadd.f32 %v2418_v8, %v2257_v16 }
 0x51c   :  { %v2258_v14 = vmul.f32 %v2701_v34, %v3771_v27  ;;  %v2705_v27 = vld [vmem:[#allocation11 + $0x3f0] sm:$0xff] }
 0x51d   :  { %v2378_v60 = vadd.f32 %v2377_v25, %v2226_v35 }
 0x51e   :  { %v1924_v11 = vpop.permute.xlu1 %1923  ;;  %v2420_v55 = vadd.f32 %v2419_v39, %v2258_v14 }
 0x51f   :  { %v2058_v54 = vpop.permute.xlu0 %2057  ;;  %v2211_v24 = vmul.f32 %v2687_v18, %v1924_v11  ;;  %v2698_v11 = vld [vmem:[#allocation11 + $0x2f0] sm:$0xff]  ;;  %v2704_v18 = vld [vmem:[#allocation11 + $0x378] sm:$0xff] }
 0x520   :  { %v2243_v23 = vmul.f32 %v2697_v46, %v2058_v54 }
 0x521   :  { %v2358_v62 = vadd.f32 %v3736_v0, %v2211_v24 }
 0x522   :  { %v1991_v6 = vpop.permute.xlu1 %1990  ;;  %v2400_v40 = vadd.f32 %v2399_v56, %v2243_v23 }
 0x523   :  { %v2125_v1 = vpop.permute.xlu0 %2124  ;;  %v2227_v48 = vmul.f32 %v2693_v33, %v1991_v6 }
 0x524   :  { %v2259_v2 = vmul.f32 %v2703_v43, %v2125_v1 }
 0x525   :  { %v2379_v0 = vadd.f32 %v2378_v60, %v2227_v48  ;;  %v2706_v48 = vld [vmem:[#allocation11 + $0x3f8] sm:$0xff] }
 0x526   :  { %v1928_v53 = vpop.permute.xlu1 %1927  ;;  %v2421_v45 = vadd.f32 %v2420_v55, %v2259_v2 }
 0x527   :  { %v2212_v63 = vmul.f32 %v2694_v26, %v1928_v53  ;;  %v1932_v12 = vpop.permute.xlu0 %1931  ;;  %v2578_v53 = vpop.eup %2577 }
 0x528   :  { %v2213_v37 = vmul.f32 %v2695_v29, %v1932_v12 }
 0x529   :  { %v2359_v22 = vadd.f32 %v2358_v62, %v2212_v63 }
 0x52a   :  { %v1995_v5 = vpop.permute.xlu1 %1994 }
 0x52b   :  { %v2360_v4 = vadd.f32 %v2359_v22, %v2213_v37  ;;  %v2228_v28 = vmul.f32 %v2698_v11, %v1995_v5  ;;  %v1999_v30 = vpop.permute.xlu0 %1998 }
 0x52c   :  { %v2229_v51 = vmul.f32 %v2700_v17, %v1999_v30 }
 0x52d   :  { %v2361_v47 = vrot.slane %v2360_v4, 4  ;;  %v2380_v20 = vadd.f32 %v2379_v0, %v2228_v28 }
 0x52e   :  { %v2062_v58 = vpop.permute.xlu1 %2061 }
 0x52f   :  { %v2362_v54 = vadd.f32 %v2361_v47, %v2360_v4  ;;  %v2381_v61 = vadd.f32 %v2380_v20, %v2229_v51  ;;  %v2244_v41 = vmul.f32 %v2702_v9, %v2062_v58  ;;  %v2066_v6 = vpop.permute.xlu0 %2065 }
 0x530   :  { %v2245_v13 = vmul.f32 %v2704_v18, %v2066_v6 }
 0x531   :  { %v2363_v24 = vrot.slane %v2362_v54, 2  ;;  %v2382_v38 = vrot.slane %v2381_v61, 4  ;;  %v2401_v7 = vadd.f32 %v2400_v40, %v2244_v41 }
 0x532   :  { %v2129_v3 = vpop.permute.xlu1 %2128 }
 0x533   :  { %v2364_v15 = vadd.f32 %v2363_v24, %v2362_v54  ;;  %v2383_v35 = vadd.f32 %v2382_v38, %v2381_v61  ;;  %v2402_v19 = vadd.f32 %v2401_v7, %v2245_v13  ;;  %v2260_v36 = vmul.f32 %v2705_v27, %v2129_v3 }
 0x535   :  { %v2365_v57 = vrot.slane %v2364_v15, 1  ;;  %v2384_v59 = vrot.slane %v2383_v35, 2  ;;  %v2403_v42 = vrot.slane %v2402_v19, 4  ;;  %v2422_v49 = vadd.f32 %v2421_v45, %v2260_v36 }
 0x536   :  { %v2133_v1 = vpop.permute.xlu1 %2132 }
 0x537   :  { %v2366_v25 = vadd.f32 %v2365_v57, %v2364_v15  ;;  %v2385_v62 = vadd.f32 %v2384_v59, %v2383_v35  ;;  %v2404_v33 = vadd.f32 %v2403_v42, %v2402_v19  ;;  %v2261_v26 = vmul.f32 %v2706_v48, %v2133_v1  ;;  %v2459_v63 = vpop.permute.xlu0 %2458 }
 0x538   :  { %v2473_v12 = vmul.f32 %v2578_v53, %v2459_v63 }
 0x539   :  { %v2386_v31 = vrot.slane %v2385_v62, 1  ;;  %v2405_v29 = vrot.slane %v2404_v33, 2  ;;  %v2423_v37 = vadd.f32 %v2422_v49, %v2261_v26  ;;  %v2441_v21 = vsel %vm1558_vm3, %v2366_v25, %v3734_v32 }
 0x53a   :  { %2474 = vst [vmem:[#allocation13] sm:$0xff] %v2473_v12 }
 0x53b   :  { %v2387_v44 = vadd.f32 %v2386_v31, %v2385_v62  ;;  %v2406_v50 = vadd.f32 %v2405_v29, %v2404_v33  ;;  %v2424_v60 = vrot.slane %v2423_v37, 4 }
 0x53c   :  { %2778 = shalt.err (!%p2775_p5)
}
 0x53d   :  { %2494 = dma.vmem_to_hbm [thread:$0]  %s2492_s2, 128, %s3802_s4, [#allocation14]   ;;  %v2407_v22 = vrot.slane %v2406_v50, 1  ;;  %v2425_v8 = vadd.f32 %v2424_v60, %v2423_v37  ;;  %v2442_v5 = vsel %vm1560_vm4, %v2387_v44, %v2441_v21  ;;  %v1597_v28 = vmul.f32 0.0, %v3604_v52 }
 0x53e   :  { %s2826_s8 = smov [#allocation12]  }
 0x53f   :  { %v2408_v32 = vadd.f32 %v2407_v22, %v2406_v50  ;;  %v2426_v46 = vrot.slane %v2425_v8, 2  ;;  %s2481_s9 = sshll.u32 %s2826_s8, 4  ;;  %s2482_s9 = int_to_ptr.vmem [resolvable:$true] %s2481_s9 }
 0x540   :  { %s2787_s4 = scalar_lea.vmem %s2482_s9, 128  ;;  %p2792_p7 = scmp.lt.s32.totalorder %s2482_s9, %s2482_s9 }
 0x541   :  { %v2427_v23 = vadd.f32 %v2426_v46, %v2425_v8  ;;  %v2443_v0 = vsel %vm1562_vm5, %v2408_v32, %v2442_v5  ;;  %p2788_p6 = scmp.ne.s32.totalorder %s2482_s9, %s2787_s4  ;;  %p2793_p8 = scmp.lt.s32.totalorder %s2787_s4, %s2787_s4 }
 0x543   :  { %v2428_v4 = vrot.slane %v2427_v23, 1  ;;  %p2794_p9 = por %p2793_p8, %p2792_p7 }
 0x545   :  { %v2429_v11 = vadd.f32 %v2428_v4, %v2427_v23  ;;  %p2795_p10 = pnand %p2794_p9, %p2788_p6 }
 0x547   :  { %v2444_v30 = vsel %vm1564_vm6, %v2429_v11, %v2443_v0 }
 0x548   :  { %v2446_v10 = vadd.f32 %v2444_v30, %v1597_v28 }
 0x54a   :  { %v2461_v16 = vmul.f32 %v2459_v63, %v2446_v10 }
 0x54c   :  { %2462 = vst [vmem:[#allocation12] sm:$0xff] %v2461_v16 }
 0x54d   :  { %2798 = shalt.err (!%p2795_p10)
}
 0x54e   :  { %2484 = dma.vmem_to_hbm [thread:$0]  %s2482_s9, 128, %s3801_s3, [#allocation8]  }
 0x54f   :  { %2811 = dma.done.wait [#allocation8], 128  }
 0x550   :  { %2812 = vsyncadd [#allocation8], 4294967168 }
 0x551   :  { %2813 = dma.done.wait [#allocation14], 128  }
 0x552   :  { %2814 = vsyncadd [#allocation14], 4294967168 }
 0x553   :  { %2501 = vsyncpa [#allocation7], 1 }
 0x554   :  { %2502 = vsyncpa [#allocation10], 1 }
 0x555   :  { %2503 = vsyncpa [#allocation8], 1 }
 0x556   :  { %2504 = vsyncpa [#allocation14], 1 }

</bundles_post_ra>
